<compile_context>
chip_gen: v6e
topology: v6e:2x2x1
jax: 0.10.0
libtpu: 0.0.40
codegen_flags: <defaults>
</compile_context>

<pallas_src>
import functools

import jax
import jax.numpy as jnp
from jax.experimental import pallas as pl
from jax.experimental.pallas import tpu as pltpu

f32 = jnp.float32
bf16 = jnp.bfloat16


# ----------------------------------------------------------------------------
# helpers
# ----------------------------------------------------------------------------
def _round_up(n, m):
    return ((n + m - 1) // m) * m


def _pick_divisor(n, limit, step, min_blocks=1):
    """Largest divisor of n that is a multiple of `step`, <= limit, leaving at
    least `min_blocks` blocks. Returns None if no such divisor exists."""
    best = None
    for d in range(step, min(n, limit) + 1, step):
        if n % d == 0 and n // d >= min_blocks:
            best = d
    return best


def _pad_gate_mat(w, h, hp, in_dim, in_pad):
    """(3h, in_dim) gate-stacked matrix -> (3hp, in_pad), each gate block padded."""
    out = jnp.zeros((3 * hp, in_pad), w.dtype)
    for k in range(3):
        out = out.at[k * hp:k * hp + h, :in_dim].set(w[k * h:(k + 1) * h, :])
    return out


def _pad_gate_vec(b, h, hp):
    out = jnp.zeros((3 * hp,), b.dtype)
    for k in range(3):
        out = out.at[k * hp:k * hp + h].set(b[k * h:(k + 1) * h])
    return out


def _vmem_capacity_bytes():
    """Per-TensorCore VMEM capacity (64 MiB on v7x, 128 MiB on v5e/v6e)."""
    try:
        return int(pltpu.get_tpu_info().vmem_capacity_bytes)
    except Exception:
        return 128 * 1024 * 1024


# ----------------------------------------------------------------------------
# Kernel 1: recurrent GRU phase (sequential over time, time-blocked grid,
#           optional 2-TensorCore batch split)
# ----------------------------------------------------------------------------
def gru_time_block_kernel(gi_ref, h0_ref, whh_ref, bhhn_ref,
                          y_ref, state_ref, h_scr, *, seq_len, seq_len_padded):
    tb = pl.program_id(1)                       # time-block index ("arbitrary" axis)
    TS, BB, _ = gi_ref.shape
    Hp = h_scr.shape[-1]

    # Re-init the carried hidden state at the start of EVERY batch block's time
    # loop (time index 0), not just the first flat grid step.
    @pl.when(tb == 0)
    def _init():
        h_scr[...] = h0_ref[0]                  # (BB, Hp)

    whh = whh_ref[...]                          # (Hp, 3Hp) bf16, single-buffered VMEM
    # Hoisted broadcast of b_hh_n (b_hh_r / b_hh_z are folded into gi already).
    bhhn = jnp.broadcast_to(bhhn_ref[...], (BB, Hp))

    def step(s, h):
        gi = gi_ref[s].astype(jnp.float32)      # (BB, 3Hp) bf16 stream -> f32 gates
        gh = jnp.dot(h.astype(jnp.bfloat16), whh,
                     preferred_element_type=jnp.float32)
        # Gate slices are lane-aligned because Hp is a multiple of 128.
        r = jax.nn.sigmoid(gi[:, 0 * Hp:1 * Hp] + gh[:, 0 * Hp:1 * Hp])
        z = jax.nn.sigmoid(gi[:, 1 * Hp:2 * Hp] + gh[:, 1 * Hp:2 * Hp])
        n = jnp.tanh(gi[:, 2 * Hp:3 * Hp] + r * (gh[:, 2 * Hp:3 * Hp] + bhhn))
        h_new = n + z * (h - n)                 # == (1-z)*n + z*h, one fewer VPU op
        if seq_len_padded != seq_len:           # only emitted when time is padded
            h_new = jnp.where(tb * TS + s < seq_len, h_new, h)
        # TODO(synk): on v5e, a (8,128) bf16 store is a masked half-vreg vst; pack
        # two timesteps or emit f32 Y there if the store slot becomes binding.
        y_ref[s] = h_new.astype(y_ref.dtype)
        return h_new

    h_final = jax.lax.fori_loop(0, TS, step, h_scr[...], unroll=True)
    h_scr[...] = h_final

    @pl.when(tb == pl.num_programs(1) - 1)
    def _fin():
        state_ref[0] = h_final


# ----------------------------------------------------------------------------
# Kernel 2: hoisted Linear head (batched, fully parallel, lane-dense)
# ----------------------------------------------------------------------------
def linear_head_kernel(y_ref, w_ref, b_ref, out_ref):
    out_ref[...] = (jnp.dot(y_ref[...], w_ref[...],
                            preferred_element_type=jnp.float32)
                    + b_ref[...]).astype(out_ref.dtype)


# ----------------------------------------------------------------------------
# Wrapper
# ----------------------------------------------------------------------------
def rnn_model_forward(tokens, h0, params, *, batch_shards=None):
    """tokens: (batch, seq) int32, h0: (1, batch, hidden) f32."""
    H = params["w_hh"].shape[1]
    V = params["w_out"].shape[0]
    B, T = tokens.shape

    # Lane-aligned padded sizes (keeps gate slices and all stores lane-dense).
    Hp = _round_up(H, 128)
    Vp = _round_up(V, 128)
    Bp = _round_up(B, 8)

    # Generation-aware budgets: v7x has 64 MiB VMEM/TC (2 TCs), v5e/v6e 128 MiB (1 TC).
    vmem_cap = _vmem_capacity_bytes()
    small_vmem = vmem_cap <= 96 * 1024 * 1024           # v7x signature
    vmem_limit = min(vmem_cap * 3 // 4, 96 * 1024 * 1024)
    ts_target = 8 if small_vmem else 16                 # bigger slabs where VMEM allows
    tn_limit = 512 if small_vmem else 1024

    # Fixed time-block size; pad T up instead of degrading TS for awkward T.
    TS = max(1, min(ts_target, T))
    Tp = _round_up(T, TS)

    # Batch split of the recurrent phase across 2 TensorCores (v7x only).
    if batch_shards is None:
        batch_shards = 2 if (small_vmem and Bp % 16 == 0) else 1
    NB = batch_shards
    BB = Bp // NB

    # --- Precompute gi = W_ih^T[token] + b_ih (+ b_hh_{r,z} folded) as a gather. ---
    w_ih_p = _pad_gate_mat(params["w_ih"].astype(f32), H, Hp, V, V)      # (3Hp, V)
    b_fold = _pad_gate_vec(params["b_ih"].astype(f32), H, Hp)            # (3Hp,)
    b_hh_p = _pad_gate_vec(params["b_hh"].astype(f32), H, Hp)            # (3Hp,)
    b_fold = b_fold.at[:2 * Hp].add(b_hh_p[:2 * Hp])                     # fold r,z biases
    gi_all = (w_ih_p.T[tokens.T] + b_fold[None, None, :]).astype(bf16)   # (T, B, 3Hp)
    gi_all = jnp.pad(gi_all, ((0, Tp - T), (0, Bp - B), (0, 0)))         # (Tp, Bp, 3Hp)
    # TODO(synk): for large T*B*H, fuse this gather into the kernel (scalar-prefetch
    # tokens + manual make_async_copy row gather) to avoid materializing gi_all.

    # --- Recurrent weights (bf16 for the MXU, f32 n-gate bias). ---
    whh_t = _pad_gate_mat(params["w_hh"].astype(f32), H, Hp, H, Hp).T.astype(bf16)  # (Hp,3Hp)
    bhhn_p = b_hh_p[2 * Hp:].reshape(1, Hp)                              # (1, Hp) f32

    # --- Head weights. ---
    w_out_p = jnp.zeros((Vp, Hp), f32).at[:V, :H].set(params["w_out"].astype(f32))
    wout_t = w_out_p.T.astype(bf16)                                      # (Hp, Vp)
    bout_p = jnp.zeros((Vp,), f32).at[:V].set(params["b_out"].astype(f32)).reshape(1, Vp)

    # --- Padded initial state (padded hidden lanes stay exactly zero). ---
    h0_p = jnp.zeros((1, Bp, Hp), f32).at[:, :B, :H].set(h0.astype(f32))

    kernel = functools.partial(gru_time_block_kernel, seq_len=T, seq_len_padded=Tp)

    # ---------------- Phase 1: sequential GRU over (batch, time) grid ----------------
    y, state = pl.pallas_call(
        kernel,
        out_shape=(
            jax.ShapeDtypeStruct((Tp, Bp, Hp), bf16),     # Y (fed to the head)
            jax.ShapeDtypeStruct((1, Bp, Hp), f32),       # final hidden state
        ),
        grid_spec=pltpu.PrefetchScalarGridSpec(
            num_scalar_prefetch=0,
            grid=(NB, Tp // TS),
            in_specs=[
                pl.BlockSpec((TS, BB, 3 * Hp), lambda bb, tb: (tb, bb, 0)),  # gi slab (bf16)
                pl.BlockSpec((1, BB, Hp), lambda bb, tb: (0, bb, 0)),        # h0
                pl.BlockSpec((Hp, 3 * Hp), lambda bb, tb: (0, 0),            # W_hh^T (bf16)
                             pipeline_mode=pl.Buffered(1)),                  # single-buffered
                pl.BlockSpec((1, Hp), lambda bb, tb: (0, 0),                 # b_hh_n
                             pipeline_mode=pl.Buffered(1)),
            ],
            out_specs=[
                pl.BlockSpec((TS, BB, Hp), lambda bb, tb: (tb, bb, 0)),      # Y slab
                pl.BlockSpec((1, BB, Hp), lambda bb, tb: (0, bb, 0)),        # state
            ],
            scratch_shapes=[pltpu.VMEM((BB, Hp), f32)],                      # carried h
        ),
        compiler_params=pltpu.CompilerParams(
            dimension_semantics=("parallel", "arbitrary"),   # batch || , time carries h
            vmem_limit_bytes=vmem_limit),
        # TODO(synk): measure-first option: hold W_hh in MXU weight regs across the
        # time block via pltpu.matmul_push_rhs / matmul_acc_lhs / matmul_pop.
    )(gi_all, h0_p, whh_t, bhhn_p)

    # ---------------- Phase 2: batched Linear head, parallel lane-dense tiles ----------------
    M = Tp * Bp
    TM = (_pick_divisor(M, 256, 16, min_blocks=2) or _pick_divisor(M, 256, 16)
          or _pick_divisor(M, 256, 8, min_blocks=2) or _pick_divisor(M, 256, 8) or M)
    TN = _pick_divisor(Vp, tn_limit, 128) or 128
    # TODO(synk): for very large H add a K grid axis + f32 accumulator; emit bf16
    # logits if downstream tolerates it (halves the (M,Vp) HBM write).

    logits_p = pl.pallas_call(
        linear_head_kernel,
        out_shape=jax.ShapeDtypeStruct((M, Vp), f32),
        grid_spec=pltpu.PrefetchScalarGridSpec(
            num_scalar_prefetch=0,
            grid=(M // TM, Vp // TN),
            in_specs=[
                pl.BlockSpec((TM, Hp), lambda i, j: (i, 0)),             # Y rows (bf16)
                pl.BlockSpec((Hp, TN), lambda i, j: (0, j)),             # W_out^T tile
                pl.BlockSpec((1, TN), lambda i, j: (0, j)),              # b_out tile
            ],
            out_specs=pl.BlockSpec((TM, TN), lambda i, j: (i, j)),
        ),
        compiler_params=pltpu.CompilerParams(
            dimension_semantics=("parallel", "parallel"),
            vmem_limit_bytes=vmem_limit),
    )(y.reshape(M, Hp), wout_t, bout_p)

    # Strip padding back to the PyTorch-visible shapes.
    out = logits_p.reshape(Tp, Bp, Vp)[:T, :B, :V].reshape(T * B, V)
    state_out = state[:, :B, :H]
    return out, state_out


# ----------------------------------------------------------------------------
# References
# ----------------------------------------------------------------------------
def rnn_model_reference_bf16(tokens, h0, params):
    """Pure-JAX reference with the SAME precision choices as the kernel
    (f32 gather + bias fold -> bf16 gi, bf16 W_hh / W_out matmuls, f32 acc/gates)."""
    H = params["w_hh"].shape[1]
    b_fold = params["b_ih"] + jnp.concatenate(
        [params["b_hh"][:2 * H], jnp.zeros((H,), f32)])
    gi_all = (params["w_ih"].T[tokens.T] + b_fold).astype(bf16)          # (T, B, 3H)
    bhh_n = params["b_hh"][2 * H:]
    whh_bf = params["w_hh"].T.astype(bf16)

    def step(h, gi):
        gi = gi.astype(f32)
        gh = jnp.dot(h.astype(bf16), whh_bf, preferred_element_type=f32)
        r = jax.nn.sigmoid(gi[:, :H] + gh[:, :H])
        z = jax.nn.sigmoid(gi[:, H:2 * H] + gh[:, H:2 * H])
        n = jnp.tanh(gi[:, 2 * H:] + r * (gh[:, 2 * H:] + bhh_n))
        h_new = n + z * (h - n)
        return h_new, h_new.astype(bf16)

    h_last, ys = jax.lax.scan(step, h0[0], gi_all)
    out = jnp.dot(ys.reshape(-1, H), params["w_out"].T.astype(bf16),
                  preferred_element_type=f32) + params["b_out"]
    return out, h_last[None]


def rnn_model_reference_f32(tokens, h0, params):
    """Full-f32 reference matching PyTorch exactly (one-hot matmul == gather)."""
    H = params["w_hh"].shape[1]
    gi_all = params["w_ih"].T[tokens.T] + params["b_ih"]

    def step(h, gi):
        gh = h @ params["w_hh"].T + params["b_hh"]
        r = jax.nn.sigmoid(gi[:, :H] + gh[:, :H])
        z = jax.nn.sigmoid(gi[:, H:2 * H] + gh[:, H:2 * H])
        n = jnp.tanh(gi[:, 2 * H:] + r * gh[:, 2 * H:])
        h_new = (1.0 - z) * n + z * h
        return h_new, h_new

    h_last, ys = jax.lax.scan(step, h0[0], gi_all)
    out = ys.reshape(-1, H) @ params["w_out"].T + params["b_out"]
    return out, h_last[None]


def init_params(key, vocab, hidden):
    """Deterministic init, uniform(-1/sqrt(H), 1/sqrt(H)) like nn.GRU/nn.Linear."""
    k = jax.random.split(key, 6)
    s = 1.0 / jnp.sqrt(hidden)
    u = lambda kk, shape: jax.random.uniform(kk, shape, jnp.float32, -s, s)
    return {
        "w_ih": u(k[0], (3 * hidden, vocab)),
        "w_hh": u(k[1], (3 * hidden, hidden)),
        "b_ih": u(k[2], (3 * hidden,)),
        "b_hh": u(k[3], (3 * hidden,)),
        "w_out": u(k[4], (vocab, hidden)),
        "b_out": u(k[5], (vocab,)),
    }


if __name__ == "__main__":
    VOCAB, HIDDEN, BATCH, SEQ = 32, 32, 8, 8

    key = jax.random.PRNGKey(0)
    kp, kt = jax.random.split(key)
    params = init_params(kp, VOCAB, HIDDEN)

    tokens = jax.random.randint(kt, (BATCH, SEQ), 0, VOCAB, dtype=jnp.int32)
    h0 = jnp.zeros((1, BATCH, HIDDEN), jnp.float32)  # RNNModel.begin_state

    out, state = rnn_model_forward(tokens, h0, params)
    out = jax.block_until_ready(out)
    state = jax.block_until_ready(state)

    assert out.shape == (SEQ * BATCH, VOCAB)
    assert state.shape == (1, BATCH, HIDDEN)

    # Same-precision reference: should match tightly.
    ref_out, ref_state = rnn_model_reference_bf16(tokens, h0, params)
    assert jnp.allclose(out, ref_out, atol=2e-3, rtol=2e-3)
    assert jnp.allclose(state, ref_state, atol=2e-3, rtol=2e-3)

    # Full-f32 PyTorch-equivalent reference: bf16 weight/gi rounding only.
    f32_out, f32_state = rnn_model_reference_f32(tokens, h0, params)
    assert jnp.allclose(out, f32_out, atol=5e-2, rtol=5e-2)
    assert jnp.allclose(state, f32_state, atol=5e-2, rtol=5e-2)

    print("KERNEL_OK")
</pallas_src>

<mosaic_0001>
module attributes {stable_mosaic.version = 11 : i64} {
  func.func @gru_time_block_kernel(%arg0: i32, %arg1: i32, %arg2: memref<8x8x384xbf16, #tpu.memory_space<vmem>>, %arg3: memref<1x8x128xf32, #tpu.memory_space<vmem>>, %arg4: memref<128x384xbf16, #tpu.memory_space<vmem>>, %arg5: memref<1x128xf32, #tpu.memory_space<vmem>>, %arg6: memref<8x8x128xbf16, #tpu.memory_space<vmem>>, %arg7: memref<1x8x128xf32, #tpu.memory_space<vmem>>, %arg8: memref<8x128xf32, #tpu.memory_space<vmem>>) attributes {dimension_semantics = [#tpu.dimension_semantics<parallel>, #tpu.dimension_semantics<arbitrary>], iteration_bounds = array<i64: 1, 1>, scalar_prefetch = 0 : i64, scratch_operands = 1 : i64, tpu.core_type = #tpu.core_type<tc>, window_params = [{transform_indices = @transform_0, window_bounds = array<i64: 8, 8, 384>}, {transform_indices = @transform_1, window_bounds = array<i64: 1, 8, 128>}, {pipeline_mode = #tpu.pipeline_mode<synchronous>, transform_indices = @transform_2, window_bounds = array<i64: 128, 384>}, {pipeline_mode = #tpu.pipeline_mode<synchronous>, transform_indices = @transform_3, window_bounds = array<i64: 1, 128>}, {transform_indices = @transform_4, window_bounds = array<i64: 8, 8, 128>}, {transform_indices = @transform_5, window_bounds = array<i64: 1, 8, 128>}]} {
    %c0_i32 = arith.constant 0 : i32
    %0 = arith.cmpi eq, %arg1, %c0_i32 : i32
    %1 = arith.extui %0 : i1 to i32
    %c0_i32_0 = arith.constant 0 : i32
    %2 = arith.cmpi ne, %1, %c0_i32_0 : i32
    scf.if %2 {
      %c0_66 = arith.constant 0 : index
      %c0_67 = arith.constant 0 : index
      %c0_68 = arith.constant 0 : index
      %300 = vector.load %arg3[%c0_66, %c0_67, %c0_68] : memref<1x8x128xf32, #tpu.memory_space<vmem>>, vector<1x8x128xf32>
      %301 = vector.shape_cast %300 : vector<1x8x128xf32> to vector<8x128xf32>
      %c0_69 = arith.constant 0 : index
      %c0_70 = arith.constant 0 : index
      %302 = vector.load %arg8[%c0_69, %c0_70] : memref<8x128xf32, #tpu.memory_space<vmem>>, vector<8x128xf32>
      tpu.vector_store %arg8[%c0_69, %c0_70], %301 {strides = array<i32>} : memref<8x128xf32, #tpu.memory_space<vmem>>, vector<8x128xf32>,
    } else {
    }
    %c0 = arith.constant 0 : index
    %c0_1 = arith.constant 0 : index
    %3 = vector.load %arg4[%c0, %c0_1] : memref<128x384xbf16, #tpu.memory_space<vmem>>, vector<128x384xbf16>
    %c0_2 = arith.constant 0 : index
    %c0_3 = arith.constant 0 : index
    %4 = vector.load %arg5[%c0_2, %c0_3] : memref<1x128xf32, #tpu.memory_space<vmem>>, vector<1x128xf32>
    %5 = vector.shape_cast %4 : vector<1x128xf32> to vector<1x128xf32>
    %6 = vector.broadcast %5 : vector<1x128xf32> to vector<8x128xf32>
    %c0_4 = arith.constant 0 : index
    %c0_5 = arith.constant 0 : index
    %7 = vector.load %arg8[%c0_4, %c0_5] : memref<8x128xf32, #tpu.memory_space<vmem>>, vector<8x128xf32>
    %c0_i32_6 = arith.constant 0 : i32
    %8 = arith.index_cast %c0_i32_6 : i32 to index
    %c0_7 = arith.constant 0 : index
    %c0_8 = arith.constant 0 : index
    %9 = vector.load %arg2[%8, %c0_7, %c0_8] : memref<8x8x384xbf16, #tpu.memory_space<vmem>>, vector<1x8x384xbf16>
    %10 = vector.shape_cast %9 : vector<1x8x384xbf16> to vector<8x384xbf16>
    %11 = arith.extf %10 : vector<8x384xbf16> to vector<8x384xf32>
    %12 = arith.truncf %7 : vector<8x128xf32> to vector<8x128xbf16>
    %cst = arith.constant dense<0.000000e+00> : vector<8x384xf32>
    %13 = tpu.matmul %12, %3, %cst {dimension_numbers = #tpu.dot_dimension_numbers<[1], [0], [0], [1], [0, 0, 1, 1], [], []>} : vector<8x128xbf16>, vector<128x384xbf16>, vector<8x384xf32> -> vector<8x384xf32>
    %14 = vector.extract_strided_slice %11 {offsets = [0, 0], sizes = [8, 128], strides = [1, 1]} : vector<8x384xf32> to vector<8x128xf32>
    %15 = vector.extract_strided_slice %13 {offsets = [0, 0], sizes = [8, 128], strides = [1, 1]} : vector<8x384xf32> to vector<8x128xf32>
    %16 = arith.addf %14, %15 : vector<8x128xf32>
    %17 = arith.negf %16 : vector<8x128xf32>
    %18 = math.exp %17 : vector<8x128xf32>
    %cst_9 = arith.constant 1.000000e+00 : f32
    %19 = vector.broadcast %cst_9 : f32 to vector<8x128xf32>
    %20 = arith.addf %19, %18 : vector<8x128xf32>
    %21 = arith.divf %19, %20 : vector<8x128xf32>
    %22 = vector.extract_strided_slice %11 {offsets = [0, 128], sizes = [8, 128], strides = [1, 1]} : vector<8x384xf32> to vector<8x128xf32>
    %23 = vector.extract_strided_slice %13 {offsets = [0, 128], sizes = [8, 128], strides = [1, 1]} : vector<8x384xf32> to vector<8x128xf32>
    %24 = arith.addf %22, %23 : vector<8x128xf32>
    %25 = arith.negf %24 : vector<8x128xf32>
    %26 = math.exp %25 : vector<8x128xf32>
    %cst_10 = arith.constant 1.000000e+00 : f32
    %27 = vector.broadcast %cst_10 : f32 to vector<8x128xf32>
    %28 = arith.addf %27, %26 : vector<8x128xf32>
    %29 = arith.divf %27, %28 : vector<8x128xf32>
    %30 = vector.extract_strided_slice %11 {offsets = [0, 256], sizes = [8, 128], strides = [1, 1]} : vector<8x384xf32> to vector<8x128xf32>
    %31 = vector.extract_strided_slice %13 {offsets = [0, 256], sizes = [8, 128], strides = [1, 1]} : vector<8x384xf32> to vector<8x128xf32>
    %32 = arith.addf %31, %6 : vector<8x128xf32>
    %33 = arith.mulf %21, %32 : vector<8x128xf32>
    %34 = arith.addf %30, %33 : vector<8x128xf32>
    %35 = math.tanh %34 : vector<8x128xf32>
    %36 = arith.subf %7, %35 : vector<8x128xf32>
    %37 = arith.mulf %29, %36 : vector<8x128xf32>
    %38 = arith.addf %35, %37 : vector<8x128xf32>
    %39 = arith.truncf %38 : vector<8x128xf32> to vector<8x128xbf16>
    %40 = arith.index_cast %c0_i32_6 : i32 to index
    %c0_11 = arith.constant 0 : index
    %c0_12 = arith.constant 0 : index
    %41 = vector.load %arg6[%40, %c0_11, %c0_12] : memref<8x8x128xbf16, #tpu.memory_space<vmem>>, vector<1x8x128xbf16>
    %42 = vector.shape_cast %41 : vector<1x8x128xbf16> to vector<8x128xbf16>
    %43 = vector.shape_cast %39 : vector<8x128xbf16> to vector<1x8x128xbf16>
    tpu.vector_store %arg6[%40, %c0_11, %c0_12], %43 {strides = array<i32>} : memref<8x8x128xbf16, #tpu.memory_space<vmem>>, vector<1x8x128xbf16>,
    %c1_i32 = arith.constant 1 : i32
    %44 = arith.index_cast %c1_i32 : i32 to index
    %c0_13 = arith.constant 0 : index
    %c0_14 = arith.constant 0 : index
    %45 = vector.load %arg2[%44, %c0_13, %c0_14] : memref<8x8x384xbf16, #tpu.memory_space<vmem>>, vector<1x8x384xbf16>
    %46 = vector.shape_cast %45 : vector<1x8x384xbf16> to vector<8x384xbf16>
    %47 = arith.extf %46 : vector<8x384xbf16> to vector<8x384xf32>
    %48 = arith.truncf %38 : vector<8x128xf32> to vector<8x128xbf16>
    %cst_15 = arith.constant dense<0.000000e+00> : vector<8x384xf32>
    %49 = tpu.matmul %48, %3, %cst_15 {dimension_numbers = #tpu.dot_dimension_numbers<[1], [0], [0], [1], [0, 0, 1, 1], [], []>} : vector<8x128xbf16>, vector<128x384xbf16>, vector<8x384xf32> -> vector<8x384xf32>
    %50 = vector.extract_strided_slice %47 {offsets = [0, 0], sizes = [8, 128], strides = [1, 1]} : vector<8x384xf32> to vector<8x128xf32>
    %51 = vector.extract_strided_slice %49 {offsets = [0, 0], sizes = [8, 128], strides = [1, 1]} : vector<8x384xf32> to vector<8x128xf32>
    %52 = arith.addf %50, %51 : vector<8x128xf32>
    %53 = arith.negf %52 : vector<8x128xf32>
    %54 = math.exp %53 : vector<8x128xf32>
    %cst_16 = arith.constant 1.000000e+00 : f32
    %55 = vector.broadcast %cst_16 : f32 to vector<8x128xf32>
    %56 = arith.addf %55, %54 : vector<8x128xf32>
    %57 = arith.divf %55, %56 : vector<8x128xf32>
    %58 = vector.extract_strided_slice %47 {offsets = [0, 128], sizes = [8, 128], strides = [1, 1]} : vector<8x384xf32> to vector<8x128xf32>
    %59 = vector.extract_strided_slice %49 {offsets = [0, 128], sizes = [8, 128], strides = [1, 1]} : vector<8x384xf32> to vector<8x128xf32>
    %60 = arith.addf %58, %59 : vector<8x128xf32>
    %61 = arith.negf %60 : vector<8x128xf32>
    %62 = math.exp %61 : vector<8x128xf32>
    %cst_17 = arith.constant 1.000000e+00 : f32
    %63 = vector.broadcast %cst_17 : f32 to vector<8x128xf32>
    %64 = arith.addf %63, %62 : vector<8x128xf32>
    %65 = arith.divf %63, %64 : vector<8x128xf32>
    %66 = vector.extract_strided_slice %47 {offsets = [0, 256], sizes = [8, 128], strides = [1, 1]} : vector<8x384xf32> to vector<8x128xf32>
    %67 = vector.extract_strided_slice %49 {offsets = [0, 256], sizes = [8, 128], strides = [1, 1]} : vector<8x384xf32> to vector<8x128xf32>
    %68 = arith.addf %67, %6 : vector<8x128xf32>
    %69 = arith.mulf %57, %68 : vector<8x128xf32>
    %70 = arith.addf %66, %69 : vector<8x128xf32>
    %71 = math.tanh %70 : vector<8x128xf32>
    %72 = arith.subf %38, %71 : vector<8x128xf32>
    %73 = arith.mulf %65, %72 : vector<8x128xf32>
    %74 = arith.addf %71, %73 : vector<8x128xf32>
    %75 = arith.truncf %74 : vector<8x128xf32> to vector<8x128xbf16>
    %76 = arith.index_cast %c1_i32 : i32 to index
    %c0_18 = arith.constant 0 : index
    %c0_19 = arith.constant 0 : index
    %77 = vector.load %arg6[%76, %c0_18, %c0_19] : memref<8x8x128xbf16, #tpu.memory_space<vmem>>, vector<1x8x128xbf16>
    %78 = vector.shape_cast %77 : vector<1x8x128xbf16> to vector<8x128xbf16>
    %79 = vector.shape_cast %75 : vector<8x128xbf16> to vector<1x8x128xbf16>
    tpu.vector_store %arg6[%76, %c0_18, %c0_19], %79 {strides = array<i32>} : memref<8x8x128xbf16, #tpu.memory_space<vmem>>, vector<1x8x128xbf16>,
    %c2_i32 = arith.constant 2 : i32
    %80 = arith.index_cast %c2_i32 : i32 to index
    %c0_20 = arith.constant 0 : index
    %c0_21 = arith.constant 0 : index
    %81 = vector.load %arg2[%80, %c0_20, %c0_21] : memref<8x8x384xbf16, #tpu.memory_space<vmem>>, vector<1x8x384xbf16>
    %82 = vector.shape_cast %81 : vector<1x8x384xbf16> to vector<8x384xbf16>
    %83 = arith.extf %82 : vector<8x384xbf16> to vector<8x384xf32>
    %84 = arith.truncf %74 : vector<8x128xf32> to vector<8x128xbf16>
    %cst_22 = arith.constant dense<0.000000e+00> : vector<8x384xf32>
    %85 = tpu.matmul %84, %3, %cst_22 {dimension_numbers = #tpu.dot_dimension_numbers<[1], [0], [0], [1], [0, 0, 1, 1], [], []>} : vector<8x128xbf16>, vector<128x384xbf16>, vector<8x384xf32> -> vector<8x384xf32>
    %86 = vector.extract_strided_slice %83 {offsets = [0, 0], sizes = [8, 128], strides = [1, 1]} : vector<8x384xf32> to vector<8x128xf32>
    %87 = vector.extract_strided_slice %85 {offsets = [0, 0], sizes = [8, 128], strides = [1, 1]} : vector<8x384xf32> to vector<8x128xf32>
    %88 = arith.addf %86, %87 : vector<8x128xf32>
    %89 = arith.negf %88 : vector<8x128xf32>
    %90 = math.exp %89 : vector<8x128xf32>
    %cst_23 = arith.constant 1.000000e+00 : f32
    %91 = vector.broadcast %cst_23 : f32 to vector<8x128xf32>
    %92 = arith.addf %91, %90 : vector<8x128xf32>
    %93 = arith.divf %91, %92 : vector<8x128xf32>
    %94 = vector.extract_strided_slice %83 {offsets = [0, 128], sizes = [8, 128], strides = [1, 1]} : vector<8x384xf32> to vector<8x128xf32>
    %95 = vector.extract_strided_slice %85 {offsets = [0, 128], sizes = [8, 128], strides = [1, 1]} : vector<8x384xf32> to vector<8x128xf32>
    %96 = arith.addf %94, %95 : vector<8x128xf32>
    %97 = arith.negf %96 : vector<8x128xf32>
    %98 = math.exp %97 : vector<8x128xf32>
    %cst_24 = arith.constant 1.000000e+00 : f32
    %99 = vector.broadcast %cst_24 : f32 to vector<8x128xf32>
    %100 = arith.addf %99, %98 : vector<8x128xf32>
    %101 = arith.divf %99, %100 : vector<8x128xf32>
    %102 = vector.extract_strided_slice %83 {offsets = [0, 256], sizes = [8, 128], strides = [1, 1]} : vector<8x384xf32> to vector<8x128xf32>
    %103 = vector.extract_strided_slice %85 {offsets = [0, 256], sizes = [8, 128], strides = [1, 1]} : vector<8x384xf32> to vector<8x128xf32>
    %104 = arith.addf %103, %6 : vector<8x128xf32>
    %105 = arith.mulf %93, %104 : vector<8x128xf32>
    %106 = arith.addf %102, %105 : vector<8x128xf32>
    %107 = math.tanh %106 : vector<8x128xf32>
    %108 = arith.subf %74, %107 : vector<8x128xf32>
    %109 = arith.mulf %101, %108 : vector<8x128xf32>
    %110 = arith.addf %107, %109 : vector<8x128xf32>
    %111 = arith.truncf %110 : vector<8x128xf32> to vector<8x128xbf16>
    %112 = arith.index_cast %c2_i32 : i32 to index
    %c0_25 = arith.constant 0 : index
    %c0_26 = arith.constant 0 : index
    %113 = vector.load %arg6[%112, %c0_25, %c0_26] : memref<8x8x128xbf16, #tpu.memory_space<vmem>>, vector<1x8x128xbf16>
    %114 = vector.shape_cast %113 : vector<1x8x128xbf16> to vector<8x128xbf16>
    %115 = vector.shape_cast %111 : vector<8x128xbf16> to vector<1x8x128xbf16>
    tpu.vector_store %arg6[%112, %c0_25, %c0_26], %115 {strides = array<i32>} : memref<8x8x128xbf16, #tpu.memory_space<vmem>>, vector<1x8x128xbf16>,
    %c3_i32 = arith.constant 3 : i32
    %116 = arith.index_cast %c3_i32 : i32 to index
    %c0_27 = arith.constant 0 : index
    %c0_28 = arith.constant 0 : index
    %117 = vector.load %arg2[%116, %c0_27, %c0_28] : memref<8x8x384xbf16, #tpu.memory_space<vmem>>, vector<1x8x384xbf16>
    %118 = vector.shape_cast %117 : vector<1x8x384xbf16> to vector<8x384xbf16>
    %119 = arith.extf %118 : vector<8x384xbf16> to vector<8x384xf32>
    %120 = arith.truncf %110 : vector<8x128xf32> to vector<8x128xbf16>
    %cst_29 = arith.constant dense<0.000000e+00> : vector<8x384xf32>
    %121 = tpu.matmul %120, %3, %cst_29 {dimension_numbers = #tpu.dot_dimension_numbers<[1], [0], [0], [1], [0, 0, 1, 1], [], []>} : vector<8x128xbf16>, vector<128x384xbf16>, vector<8x384xf32> -> vector<8x384xf32>
    %122 = vector.extract_strided_slice %119 {offsets = [0, 0], sizes = [8, 128], strides = [1, 1]} : vector<8x384xf32> to vector<8x128xf32>
    %123 = vector.extract_strided_slice %121 {offsets = [0, 0], sizes = [8, 128], strides = [1, 1]} : vector<8x384xf32> to vector<8x128xf32>
    %124 = arith.addf %122, %123 : vector<8x128xf32>
    %125 = arith.negf %124 : vector<8x128xf32>
    %126 = math.exp %125 : vector<8x128xf32>
    %cst_30 = arith.constant 1.000000e+00 : f32
    %127 = vector.broadcast %cst_30 : f32 to vector<8x128xf32>
    %128 = arith.addf %127, %126 : vector<8x128xf32>
    %129 = arith.divf %127, %128 : vector<8x128xf32>
    %130 = vector.extract_strided_slice %119 {offsets = [0, 128], sizes = [8, 128], strides = [1, 1]} : vector<8x384xf32> to vector<8x128xf32>
    %131 = vector.extract_strided_slice %121 {offsets = [0, 128], sizes = [8, 128], strides = [1, 1]} : vector<8x384xf32> to vector<8x128xf32>
    %132 = arith.addf %130, %131 : vector<8x128xf32>
    %133 = arith.negf %132 : vector<8x128xf32>
    %134 = math.exp %133 : vector<8x128xf32>
    %cst_31 = arith.constant 1.000000e+00 : f32
    %135 = vector.broadcast %cst_31 : f32 to vector<8x128xf32>
    %136 = arith.addf %135, %134 : vector<8x128xf32>
    %137 = arith.divf %135, %136 : vector<8x128xf32>
    %138 = vector.extract_strided_slice %119 {offsets = [0, 256], sizes = [8, 128], strides = [1, 1]} : vector<8x384xf32> to vector<8x128xf32>
    %139 = vector.extract_strided_slice %121 {offsets = [0, 256], sizes = [8, 128], strides = [1, 1]} : vector<8x384xf32> to vector<8x128xf32>
    %140 = arith.addf %139, %6 : vector<8x128xf32>
    %141 = arith.mulf %129, %140 : vector<8x128xf32>
    %142 = arith.addf %138, %141 : vector<8x128xf32>
    %143 = math.tanh %142 : vector<8x128xf32>
    %144 = arith.subf %110, %143 : vector<8x128xf32>
    %145 = arith.mulf %137, %144 : vector<8x128xf32>
    %146 = arith.addf %143, %145 : vector<8x128xf32>
    %147 = arith.truncf %146 : vector<8x128xf32> to vector<8x128xbf16>
    %148 = arith.index_cast %c3_i32 : i32 to index
    %c0_32 = arith.constant 0 : index
    %c0_33 = arith.constant 0 : index
    %149 = vector.load %arg6[%148, %c0_32, %c0_33] : memref<8x8x128xbf16, #tpu.memory_space<vmem>>, vector<1x8x128xbf16>
    %150 = vector.shape_cast %149 : vector<1x8x128xbf16> to vector<8x128xbf16>
    %151 = vector.shape_cast %147 : vector<8x128xbf16> to vector<1x8x128xbf16>
    tpu.vector_store %arg6[%148, %c0_32, %c0_33], %151 {strides = array<i32>} : memref<8x8x128xbf16, #tpu.memory_space<vmem>>, vector<1x8x128xbf16>,
    %c4_i32 = arith.constant 4 : i32
    %152 = arith.index_cast %c4_i32 : i32 to index
    %c0_34 = arith.constant 0 : index
    %c0_35 = arith.constant 0 : index
    %153 = vector.load %arg2[%152, %c0_34, %c0_35] : memref<8x8x384xbf16, #tpu.memory_space<vmem>>, vector<1x8x384xbf16>
    %154 = vector.shape_cast %153 : vector<1x8x384xbf16> to vector<8x384xbf16>
    %155 = arith.extf %154 : vector<8x384xbf16> to vector<8x384xf32>
    %156 = arith.truncf %146 : vector<8x128xf32> to vector<8x128xbf16>
    %cst_36 = arith.constant dense<0.000000e+00> : vector<8x384xf32>
    %157 = tpu.matmul %156, %3, %cst_36 {dimension_numbers = #tpu.dot_dimension_numbers<[1], [0], [0], [1], [0, 0, 1, 1], [], []>} : vector<8x128xbf16>, vector<128x384xbf16>, vector<8x384xf32> -> vector<8x384xf32>
    %158 = vector.extract_strided_slice %155 {offsets = [0, 0], sizes = [8, 128], strides = [1, 1]} : vector<8x384xf32> to vector<8x128xf32>
    %159 = vector.extract_strided_slice %157 {offsets = [0, 0], sizes = [8, 128], strides = [1, 1]} : vector<8x384xf32> to vector<8x128xf32>
    %160 = arith.addf %158, %159 : vector<8x128xf32>
    %161 = arith.negf %160 : vector<8x128xf32>
    %162 = math.exp %161 : vector<8x128xf32>
    %cst_37 = arith.constant 1.000000e+00 : f32
    %163 = vector.broadcast %cst_37 : f32 to vector<8x128xf32>
    %164 = arith.addf %163, %162 : vector<8x128xf32>
    %165 = arith.divf %163, %164 : vector<8x128xf32>
    %166 = vector.extract_strided_slice %155 {offsets = [0, 128], sizes = [8, 128], strides = [1, 1]} : vector<8x384xf32> to vector<8x128xf32>
    %167 = vector.extract_strided_slice %157 {offsets = [0, 128], sizes = [8, 128], strides = [1, 1]} : vector<8x384xf32> to vector<8x128xf32>
    %168 = arith.addf %166, %167 : vector<8x128xf32>
    %169 = arith.negf %168 : vector<8x128xf32>
    %170 = math.exp %169 : vector<8x128xf32>
    %cst_38 = arith.constant 1.000000e+00 : f32
    %171 = vector.broadcast %cst_38 : f32 to vector<8x128xf32>
    %172 = arith.addf %171, %170 : vector<8x128xf32>
    %173 = arith.divf %171, %172 : vector<8x128xf32>
    %174 = vector.extract_strided_slice %155 {offsets = [0, 256], sizes = [8, 128], strides = [1, 1]} : vector<8x384xf32> to vector<8x128xf32>
    %175 = vector.extract_strided_slice %157 {offsets = [0, 256], sizes = [8, 128], strides = [1, 1]} : vector<8x384xf32> to vector<8x128xf32>
    %176 = arith.addf %175, %6 : vector<8x128xf32>
    %177 = arith.mulf %165, %176 : vector<8x128xf32>
    %178 = arith.addf %174, %177 : vector<8x128xf32>
    %179 = math.tanh %178 : vector<8x128xf32>
    %180 = arith.subf %146, %179 : vector<8x128xf32>
    %181 = arith.mulf %173, %180 : vector<8x128xf32>
    %182 = arith.addf %179, %181 : vector<8x128xf32>
    %183 = arith.truncf %182 : vector<8x128xf32> to vector<8x128xbf16>
    %184 = arith.index_cast %c4_i32 : i32 to index
    %c0_39 = arith.constant 0 : index
    %c0_40 = arith.constant 0 : index
    %185 = vector.load %arg6[%184, %c0_39, %c0_40] : memref<8x8x128xbf16, #tpu.memory_space<vmem>>, vector<1x8x128xbf16>
    %186 = vector.shape_cast %185 : vector<1x8x128xbf16> to vector<8x128xbf16>
    %187 = vector.shape_cast %183 : vector<8x128xbf16> to vector<1x8x128xbf16>
    tpu.vector_store %arg6[%184, %c0_39, %c0_40], %187 {strides = array<i32>} : memref<8x8x128xbf16, #tpu.memory_space<vmem>>, vector<1x8x128xbf16>,
    %c5_i32 = arith.constant 5 : i32
    %188 = arith.index_cast %c5_i32 : i32 to index
    %c0_41 = arith.constant 0 : index
    %c0_42 = arith.constant 0 : index
    %189 = vector.load %arg2[%188, %c0_41, %c0_42] : memref<8x8x384xbf16, #tpu.memory_space<vmem>>, vector<1x8x384xbf16>
    %190 = vector.shape_cast %189 : vector<1x8x384xbf16> to vector<8x384xbf16>
    %191 = arith.extf %190 : vector<8x384xbf16> to vector<8x384xf32>
    %192 = arith.truncf %182 : vector<8x128xf32> to vector<8x128xbf16>
    %cst_43 = arith.constant dense<0.000000e+00> : vector<8x384xf32>
    %193 = tpu.matmul %192, %3, %cst_43 {dimension_numbers = #tpu.dot_dimension_numbers<[1], [0], [0], [1], [0, 0, 1, 1], [], []>} : vector<8x128xbf16>, vector<128x384xbf16>, vector<8x384xf32> -> vector<8x384xf32>
    %194 = vector.extract_strided_slice %191 {offsets = [0, 0], sizes = [8, 128], strides = [1, 1]} : vector<8x384xf32> to vector<8x128xf32>
    %195 = vector.extract_strided_slice %193 {offsets = [0, 0], sizes = [8, 128], strides = [1, 1]} : vector<8x384xf32> to vector<8x128xf32>
    %196 = arith.addf %194, %195 : vector<8x128xf32>
    %197 = arith.negf %196 : vector<8x128xf32>
    %198 = math.exp %197 : vector<8x128xf32>
    %cst_44 = arith.constant 1.000000e+00 : f32
    %199 = vector.broadcast %cst_44 : f32 to vector<8x128xf32>
    %200 = arith.addf %199, %198 : vector<8x128xf32>
    %201 = arith.divf %199, %200 : vector<8x128xf32>
    %202 = vector.extract_strided_slice %191 {offsets = [0, 128], sizes = [8, 128], strides = [1, 1]} : vector<8x384xf32> to vector<8x128xf32>
    %203 = vector.extract_strided_slice %193 {offsets = [0, 128], sizes = [8, 128], strides = [1, 1]} : vector<8x384xf32> to vector<8x128xf32>
    %204 = arith.addf %202, %203 : vector<8x128xf32>
    %205 = arith.negf %204 : vector<8x128xf32>
    %206 = math.exp %205 : vector<8x128xf32>
    %cst_45 = arith.constant 1.000000e+00 : f32
    %207 = vector.broadcast %cst_45 : f32 to vector<8x128xf32>
    %208 = arith.addf %207, %206 : vector<8x128xf32>
    %209 = arith.divf %207, %208 : vector<8x128xf32>
    %210 = vector.extract_strided_slice %191 {offsets = [0, 256], sizes = [8, 128], strides = [1, 1]} : vector<8x384xf32> to vector<8x128xf32>
    %211 = vector.extract_strided_slice %193 {offsets = [0, 256], sizes = [8, 128], strides = [1, 1]} : vector<8x384xf32> to vector<8x128xf32>
    %212 = arith.addf %211, %6 : vector<8x128xf32>
    %213 = arith.mulf %201, %212 : vector<8x128xf32>
    %214 = arith.addf %210, %213 : vector<8x128xf32>
    %215 = math.tanh %214 : vector<8x128xf32>
    %216 = arith.subf %182, %215 : vector<8x128xf32>
    %217 = arith.mulf %209, %216 : vector<8x128xf32>
    %218 = arith.addf %215, %217 : vector<8x128xf32>
    %219 = arith.truncf %218 : vector<8x128xf32> to vector<8x128xbf16>
    %220 = arith.index_cast %c5_i32 : i32 to index
    %c0_46 = arith.constant 0 : index
    %c0_47 = arith.constant 0 : index
    %221 = vector.load %arg6[%220, %c0_46, %c0_47] : memref<8x8x128xbf16, #tpu.memory_space<vmem>>, vector<1x8x128xbf16>
    %222 = vector.shape_cast %221 : vector<1x8x128xbf16> to vector<8x128xbf16>
    %223 = vector.shape_cast %219 : vector<8x128xbf16> to vector<1x8x128xbf16>
    tpu.vector_store %arg6[%220, %c0_46, %c0_47], %223 {strides = array<i32>} : memref<8x8x128xbf16, #tpu.memory_space<vmem>>, vector<1x8x128xbf16>,
    %c6_i32 = arith.constant 6 : i32
    %224 = arith.index_cast %c6_i32 : i32 to index
    %c0_48 = arith.constant 0 : index
    %c0_49 = arith.constant 0 : index
    %225 = vector.load %arg2[%224, %c0_48, %c0_49] : memref<8x8x384xbf16, #tpu.memory_space<vmem>>, vector<1x8x384xbf16>
    %226 = vector.shape_cast %225 : vector<1x8x384xbf16> to vector<8x384xbf16>
    %227 = arith.extf %226 : vector<8x384xbf16> to vector<8x384xf32>
    %228 = arith.truncf %218 : vector<8x128xf32> to vector<8x128xbf16>
    %cst_50 = arith.constant dense<0.000000e+00> : vector<8x384xf32>
    %229 = tpu.matmul %228, %3, %cst_50 {dimension_numbers = #tpu.dot_dimension_numbers<[1], [0], [0], [1], [0, 0, 1, 1], [], []>} : vector<8x128xbf16>, vector<128x384xbf16>, vector<8x384xf32> -> vector<8x384xf32>
    %230 = vector.extract_strided_slice %227 {offsets = [0, 0], sizes = [8, 128], strides = [1, 1]} : vector<8x384xf32> to vector<8x128xf32>
    %231 = vector.extract_strided_slice %229 {offsets = [0, 0], sizes = [8, 128], strides = [1, 1]} : vector<8x384xf32> to vector<8x128xf32>
    %232 = arith.addf %230, %231 : vector<8x128xf32>
    %233 = arith.negf %232 : vector<8x128xf32>
    %234 = math.exp %233 : vector<8x128xf32>
    %cst_51 = arith.constant 1.000000e+00 : f32
    %235 = vector.broadcast %cst_51 : f32 to vector<8x128xf32>
    %236 = arith.addf %235, %234 : vector<8x128xf32>
    %237 = arith.divf %235, %236 : vector<8x128xf32>
    %238 = vector.extract_strided_slice %227 {offsets = [0, 128], sizes = [8, 128], strides = [1, 1]} : vector<8x384xf32> to vector<8x128xf32>
    %239 = vector.extract_strided_slice %229 {offsets = [0, 128], sizes = [8, 128], strides = [1, 1]} : vector<8x384xf32> to vector<8x128xf32>
    %240 = arith.addf %238, %239 : vector<8x128xf32>
    %241 = arith.negf %240 : vector<8x128xf32>
    %242 = math.exp %241 : vector<8x128xf32>
    %cst_52 = arith.constant 1.000000e+00 : f32
    %243 = vector.broadcast %cst_52 : f32 to vector<8x128xf32>
    %244 = arith.addf %243, %242 : vector<8x128xf32>
    %245 = arith.divf %243, %244 : vector<8x128xf32>
    %246 = vector.extract_strided_slice %227 {offsets = [0, 256], sizes = [8, 128], strides = [1, 1]} : vector<8x384xf32> to vector<8x128xf32>
    %247 = vector.extract_strided_slice %229 {offsets = [0, 256], sizes = [8, 128], strides = [1, 1]} : vector<8x384xf32> to vector<8x128xf32>
    %248 = arith.addf %247, %6 : vector<8x128xf32>
    %249 = arith.mulf %237, %248 : vector<8x128xf32>
    %250 = arith.addf %246, %249 : vector<8x128xf32>
    %251 = math.tanh %250 : vector<8x128xf32>
    %252 = arith.subf %218, %251 : vector<8x128xf32>
    %253 = arith.mulf %245, %252 : vector<8x128xf32>
    %254 = arith.addf %251, %253 : vector<8x128xf32>
    %255 = arith.truncf %254 : vector<8x128xf32> to vector<8x128xbf16>
    %256 = arith.index_cast %c6_i32 : i32 to index
    %c0_53 = arith.constant 0 : index
    %c0_54 = arith.constant 0 : index
    %257 = vector.load %arg6[%256, %c0_53, %c0_54] : memref<8x8x128xbf16, #tpu.memory_space<vmem>>, vector<1x8x128xbf16>
    %258 = vector.shape_cast %257 : vector<1x8x128xbf16> to vector<8x128xbf16>
    %259 = vector.shape_cast %255 : vector<8x128xbf16> to vector<1x8x128xbf16>
    tpu.vector_store %arg6[%256, %c0_53, %c0_54], %259 {strides = array<i32>} : memref<8x8x128xbf16, #tpu.memory_space<vmem>>, vector<1x8x128xbf16>,
    %c7_i32 = arith.constant 7 : i32
    %260 = arith.index_cast %c7_i32 : i32 to index
    %c0_55 = arith.constant 0 : index
    %c0_56 = arith.constant 0 : index
    %261 = vector.load %arg2[%260, %c0_55, %c0_56] : memref<8x8x384xbf16, #tpu.memory_space<vmem>>, vector<1x8x384xbf16>
    %262 = vector.shape_cast %261 : vector<1x8x384xbf16> to vector<8x384xbf16>
    %263 = arith.extf %262 : vector<8x384xbf16> to vector<8x384xf32>
    %264 = arith.truncf %254 : vector<8x128xf32> to vector<8x128xbf16>
    %cst_57 = arith.constant dense<0.000000e+00> : vector<8x384xf32>
    %265 = tpu.matmul %264, %3, %cst_57 {dimension_numbers = #tpu.dot_dimension_numbers<[1], [0], [0], [1], [0, 0, 1, 1], [], []>} : vector<8x128xbf16>, vector<128x384xbf16>, vector<8x384xf32> -> vector<8x384xf32>
    %266 = vector.extract_strided_slice %263 {offsets = [0, 0], sizes = [8, 128], strides = [1, 1]} : vector<8x384xf32> to vector<8x128xf32>
    %267 = vector.extract_strided_slice %265 {offsets = [0, 0], sizes = [8, 128], strides = [1, 1]} : vector<8x384xf32> to vector<8x128xf32>
    %268 = arith.addf %266, %267 : vector<8x128xf32>
    %269 = arith.negf %268 : vector<8x128xf32>
    %270 = math.exp %269 : vector<8x128xf32>
    %cst_58 = arith.constant 1.000000e+00 : f32
    %271 = vector.broadcast %cst_58 : f32 to vector<8x128xf32>
    %272 = arith.addf %271, %270 : vector<8x128xf32>
    %273 = arith.divf %271, %272 : vector<8x128xf32>
    %274 = vector.extract_strided_slice %263 {offsets = [0, 128], sizes = [8, 128], strides = [1, 1]} : vector<8x384xf32> to vector<8x128xf32>
    %275 = vector.extract_strided_slice %265 {offsets = [0, 128], sizes = [8, 128], strides = [1, 1]} : vector<8x384xf32> to vector<8x128xf32>
    %276 = arith.addf %274, %275 : vector<8x128xf32>
    %277 = arith.negf %276 : vector<8x128xf32>
    %278 = math.exp %277 : vector<8x128xf32>
    %cst_59 = arith.constant 1.000000e+00 : f32
    %279 = vector.broadcast %cst_59 : f32 to vector<8x128xf32>
    %280 = arith.addf %279, %278 : vector<8x128xf32>
    %281 = arith.divf %279, %280 : vector<8x128xf32>
    %282 = vector.extract_strided_slice %263 {offsets = [0, 256], sizes = [8, 128], strides = [1, 1]} : vector<8x384xf32> to vector<8x128xf32>
    %283 = vector.extract_strided_slice %265 {offsets = [0, 256], sizes = [8, 128], strides = [1, 1]} : vector<8x384xf32> to vector<8x128xf32>
    %284 = arith.addf %283, %6 : vector<8x128xf32>
    %285 = arith.mulf %273, %284 : vector<8x128xf32>
    %286 = arith.addf %282, %285 : vector<8x128xf32>
    %287 = math.tanh %286 : vector<8x128xf32>
    %288 = arith.subf %254, %287 : vector<8x128xf32>
    %289 = arith.mulf %281, %288 : vector<8x128xf32>
    %290 = arith.addf %287, %289 : vector<8x128xf32>
    %291 = arith.truncf %290 : vector<8x128xf32> to vector<8x128xbf16>
    %292 = arith.index_cast %c7_i32 : i32 to index
    %c0_60 = arith.constant 0 : index
    %c0_61 = arith.constant 0 : index
    %293 = vector.load %arg6[%292, %c0_60, %c0_61] : memref<8x8x128xbf16, #tpu.memory_space<vmem>>, vector<1x8x128xbf16>
    %294 = vector.shape_cast %293 : vector<1x8x128xbf16> to vector<8x128xbf16>
    %295 = vector.shape_cast %291 : vector<8x128xbf16> to vector<1x8x128xbf16>
    tpu.vector_store %arg6[%292, %c0_60, %c0_61], %295 {strides = array<i32>} : memref<8x8x128xbf16, #tpu.memory_space<vmem>>, vector<1x8x128xbf16>,
    %c8_i32 = arith.constant 8 : i32
    %c0_62 = arith.constant 0 : index
    %c0_63 = arith.constant 0 : index
    %296 = vector.load %arg8[%c0_62, %c0_63] : memref<8x128xf32, #tpu.memory_space<vmem>>, vector<8x128xf32>
    tpu.vector_store %arg8[%c0_62, %c0_63], %290 {strides = array<i32>} : memref<8x128xf32, #tpu.memory_space<vmem>>, vector<8x128xf32>,
    %c0_i32_64 = arith.constant 0 : i32
    %297 = arith.cmpi eq, %arg1, %c0_i32_64 : i32
    %298 = arith.extui %297 : i1 to i32
    %c0_i32_65 = arith.constant 0 : i32
    %299 = arith.cmpi ne, %298, %c0_i32_65 : i32
    scf.if %299 {
      %c0_66 = arith.constant 0 : index
      %c0_67 = arith.constant 0 : index
      %c0_68 = arith.constant 0 : index
      %300 = vector.load %arg7[%c0_66, %c0_67, %c0_68] : memref<1x8x128xf32, #tpu.memory_space<vmem>>, vector<1x8x128xf32>
      %301 = vector.shape_cast %300 : vector<1x8x128xf32> to vector<8x128xf32>
      %302 = vector.shape_cast %290 : vector<8x128xf32> to vector<1x8x128xf32>
      tpu.vector_store %arg7[%c0_66, %c0_67, %c0_68], %302 {strides = array<i32>} : memref<1x8x128xf32, #tpu.memory_space<vmem>>, vector<1x8x128xf32>,
    } else {
    }
    return
  }
  func.func @transform_0(%arg0: i32, %arg1: i32) -> (i32, i32, i32) {
    %c0_i32 = arith.constant 0 : i32
    %c0_i32_0 = arith.constant 0 : i32
    return %arg1, %arg0, %c0_i32 : i32, i32, i32
  }
  func.func @transform_1(%arg0: i32, %arg1: i32) -> (i32, i32, i32) {
    %c0_i32 = arith.constant 0 : i32
    %c0_i32_0 = arith.constant 0 : i32
    %c0_i32_1 = arith.constant 0 : i32
    return %c0_i32, %arg0, %c0_i32_0 : i32, i32, i32
  }
  func.func @transform_2(%arg0: i32, %arg1: i32) -> (i32, i32) {
    %c0_i32 = arith.constant 0 : i32
    %c0_i32_0 = arith.constant 0 : i32
    %c0_i32_1 = arith.constant 0 : i32
    return %c0_i32, %c0_i32_0 : i32, i32
  }
  func.func @transform_3(%arg0: i32, %arg1: i32) -> (i32, i32) {
    %c0_i32 = arith.constant 0 : i32
    %c0_i32_0 = arith.constant 0 : i32
    %c0_i32_1 = arith.constant 0 : i32
    return %c0_i32, %c0_i32_0 : i32, i32
  }
  func.func @transform_4(%arg0: i32, %arg1: i32) -> (i32, i32, i32) {
    %c0_i32 = arith.constant 0 : i32
    %c0_i32_0 = arith.constant 0 : i32
    return %arg1, %arg0, %c0_i32 : i32, i32, i32
  }
  func.func @transform_5(%arg0: i32, %arg1: i32) -> (i32, i32, i32) {
    %c0_i32 = arith.constant 0 : i32
    %c0_i32_0 = arith.constant 0 : i32
    %c0_i32_1 = arith.constant 0 : i32
    return %c0_i32, %arg0, %c0_i32_0 : i32, i32, i32
  }
}

</mosaic_0001>

<bundles_post_ra>
// kernel: tpu_custom_call.1
= control target key start
LH: loop header
LB: loop body
LE: loop exit
PB: predicated region body
PF: predicated region fallthrough
CT: control target
= control target key end

     0   :  { %11 = vsyncpa [#allocation4], 0  ;;  %s2109_s0 = inlined_call_operand.hbm [shape: bf16[8,8,384], index: 0, kind: input, shape index: {}]   ;;  %s2110_s1 = inlined_call_operand.hbm [shape: f32[1,8,128], index: 1, kind: input, shape index: {}]   ;;  %s2111_s2 = inlined_call_operand.hbm [shape: bf16[128,384], index: 2, kind: input, shape index: {}]   ;;  %s2112_s3 = inlined_call_operand.vmem [shape: f32[1,128], index: 3, kind: input, shape index: {}]   ;;  %s2113_s4 = inlined_call_operand.hbm [shape: bf16[8,8,128], index: 4, kind: output, shape index: {0}]   ;;  %s2114_s5 = inlined_call_operand.hbm [shape: f32[1,8,128], index: 5, kind: output, shape index: {1}]  }
   0x1   :  { %12 = vsyncpa [#allocation7], 0 }
   0x2   :  { %13 = vsyncpa [#allocation5], 0 }
   0x3   :  { %14 = vsyncpa [#allocation11], 0  ;;  %s1670_s18 = smov [#allocation6]   ;;  %s1671_s20 = smov [#allocation3]  }
   0x4   :  { %s33_s19 = sshll.u32 %s1670_s18, 4  ;;  %s20_s21 = sshll.u32 %s1671_s20, 4  ;;  %s34_s19 = int_to_ptr.vmem [resolvable:$true] %s33_s19  ;;  %s21_s21 = int_to_ptr.vmem [resolvable:$true] %s20_s21 }
   0x5   :  { %s1570_s22 = scalar_lea.vmem %s34_s19, 128  ;;  %p1575_p1 = scmp.lt.s32.totalorder %s34_s19, %s34_s19 }
   0x6   :  { %p1571_p0 = scmp.ne.s32.totalorder %s34_s19, %s1570_s22  ;;  %p1576_p2 = scmp.lt.s32.totalorder %s1570_s22, %s1570_s22 }
   0x8   :  { %p1577_p3 = por %p1576_p2, %p1575_p1 }
   0xa   :  { %p1578_p4 = pnand %p1577_p3, %p1571_p0 }
   0xc   :  { %1581 = shalt.err (!%p1578_p4)
}
   0xd   :  { %36 = dma.hbm_to_vmem [thread:$0]  %s2110_s1, 128, %s34_s19, [#allocation7]  }
   0xe   :  { %s1590_s25 = scalar_lea.vmem %s21_s21, 1536  ;;  %p1595_p6 = scmp.lt.s32.totalorder %s21_s21, %s21_s21 }
   0xf   :  { %p1591_p5 = scmp.ne.s32.totalorder %s21_s21, %s1590_s25  ;;  %p1596_p7 = scmp.lt.s32.totalorder %s1590_s25, %s1590_s25 }
  0x11   :  { %p1597_p8 = por %p1596_p7, %p1595_p6 }
  0x13   :  { %p1598_p9 = pnand %p1597_p8, %p1591_p5 }
  0x15   :  { %1601 = shalt.err (!%p1598_p9)
}
  0x16   :  { %s1672_s26 = smov 192   ;;  %s1673_s27 = smov 12  }
  0x17   :  { %26 = dma.hbm_to_vmem [thread:$0]  %s2109_s0, 1536, %s21_s21, [#allocation4], %s1672_s26, %s1672_s26, %s1673_s27  }
  0x18   :  { %s1674_s30 = smov [#allocation8]  }
  0x19   :  { %s42_s6 = sshll.u32 %s1674_s30, 4  ;;  %s43_s6 = int_to_ptr.vmem [resolvable:$true] %s42_s6 }
  0x1a   :  { %s1610_s7 = scalar_lea.vmem %s43_s6, 3072  ;;  %p1615_p11 = scmp.lt.s32.totalorder %s43_s6, %s43_s6 }
  0x1b   :  { %p1611_p10 = scmp.ne.s32.totalorder %s43_s6, %s1610_s7  ;;  %p1616_p12 = scmp.lt.s32.totalorder %s1610_s7, %s1610_s7 }
  0x1d   :  { %p1617_p13 = por %p1616_p12, %p1615_p11 }
  0x1f   :  { %p1618_p0 = pnand %p1617_p13, %p1611_p10 }
  0x21   :  { %1621 = shalt.err (!%p1618_p0)
}
  0x22   :  { %48 = dma.hbm_to_vmem [thread:$0]  %s2111_s2, 3072, %s43_s6, [#allocation7], %s1672_s26, %s1672_s26, %s1673_s27  }
  0x23   :  { %1662 = dma.done.wait [#allocation4], 1536  }
  0x24   :  { %1663 = vsyncadd [#allocation4], 4294965760 }
  0x25   :  { %1664 = dma.done.wait [#allocation7], 3200  }
  0x26   :  { %1665 = vsyncadd [#allocation7], 4294964096  ;;  %v1675_v0 = vmov 0.0   ;;  %v1676_v1 = vmov 0   ;;  %vm1677_vm0 = vmmov 0   ;;  %v1789_v23 = vld [vmem:[#allocation6] sm:$0xff] }
  0x27   :  { %1272 = vmatprep.subr.bf16.mxu1 %v1675_v0  ;;  %273 = vmatprep.mubr.bf16.mxu0 %v1676_v1  ;;  %v1725_v2 = vld [vmem:[#allocation8 + $0xac] ss:$12 sps:$4 sm:$0xff]   ;;  %v1727_v3 = vld [vmem:[#allocation8 + $0xa8] ss:$12 sps:$4 sm:$0xff]   ;;  %v1733_v5 = vld [vmem:[#allocation8 + $0x90] ss:$12 sps:$4 sm:$0xff]   ;;  %v112_v25 = vpack.c.bf16 %v1789_v23, %v1789_v23 }
  0x28   :  { %1288 = vmatprep.mubr.msk.bf16.mxu1 %vm1677_vm0, %v1675_v0  ;;  %241 = vmatprep.subr.bf16.mxu0 %v1725_v2  ;;  %v1730_v4 = vld [vmem:[#allocation8 + $0x94] ss:$12 sps:$4 sm:$0xff]   ;;  %v1736_v6 = vld [vmem:[#allocation8 + $0x7c] ss:$12 sps:$4 sm:$0xff]   ;;  %v1739_v7 = vld [vmem:[#allocation8 + $0x78] ss:$12 sps:$4 sm:$0xff]  }
  0x29   :  { %242 = vmatpush1.bf16.msra.mxu0 %v1727_v3  ;;  %v1742_v8 = vld [vmem:[#allocation8 + $0x64] ss:$12 sps:$4 sm:$0xff]   ;;  %v1747_v10 = vld [vmem:[#allocation8 + $0x60] ss:$12 sps:$4 sm:$0xff]   ;;  %v1756_v13 = vld [vmem:[#allocation8 + $0x48] ss:$12 sps:$4 sm:$0xff]  }
  0x2a   :  { %243 = vmatprep.subr.bf16.mxu0 %v1730_v4  ;;  %v1744_v9 = vld [vmem:[#allocation8 + $0xb0] ss:$12 sps:$4 sm:$0xff]   ;;  %v1750_v11 = vld [vmem:[#allocation8 + $0x4c] ss:$12 sps:$4 sm:$0xff]   ;;  %v1759_v14 = vld [vmem:[#allocation8 + $0x34] ss:$12 sps:$4 sm:$0xff]  }
  0x2b   :  { %1273 = vmatpush3.bf16.msra.mxu1 %v1744_v9  ;;  %v1753_v12 = vld [vmem:[#allocation8 + $0x98] ss:$12 sps:$4 sm:$0xff]   ;;  %v1763_v15 = vld [vmem:[#allocation8 + $0x80] ss:$12 sps:$4 sm:$0xff]   ;;  %v1767_v16 = vld [vmem:[#allocation8 + $0x30] ss:$12 sps:$4 sm:$0xff]  }
  0x2c   :  { %1274 = vmatprep.subr.bf16.mxu1 %v1675_v0  ;;  %v1770_v17 = vld [vmem:[#allocation8 + $0x1c] ss:$12 sps:$4 sm:$0xff]   ;;  %v1777_v19 = vld [vmem:[#allocation8 + $0x18] ss:$12 sps:$4 sm:$0xff]   ;;  %v1787_v22 = vld [vmem:[#allocation8] ss:$12 sps:$4 sm:$0xff]  }
  0x2d   :  { %244 = vmatpush1.bf16.msra.mxu0 %v1733_v5  ;;  %v1773_v18 = vld [vmem:[#allocation8 + $0x68] ss:$12 sps:$4 sm:$0xff]   ;;  %v1780_v20 = vld [vmem:[#allocation8 + $0x4] ss:$12 sps:$4 sm:$0xff]   ;;  %v1800_v26 = vld [vmem:[#allocation8 + $0x20] ss:$12 sps:$4 sm:$0xff]  }
  0x2e   :  { %245 = vmatprep.subr.bf16.mxu0 %v1736_v6  ;;  %v1783_v21 = vld [vmem:[#allocation8 + $0x50] ss:$12 sps:$4 sm:$0xff]   ;;  %v1793_v24 = vld [vmem:[#allocation8 + $0x38] ss:$12 sps:$4 sm:$0xff]   ;;  %v1807_v27 = vld [vmem:[#allocation8 + $0x8] ss:$12 sps:$4 sm:$0xff]  }
  0x2f   :  { %1275 = vmatpush3.bf16.msra.mxu1 %v1753_v12  ;;  %v107_v28 = vld [vmem:[#allocation3] sm:$0xff]  ;;  %v1850_v46 = vld [vmem:[#allocation3 + $0x8] ss:$12 sps:$4 sm:$0xff]   ;;  %v346_v60 = vld [vmem:[#allocation3 + $0xc] sm:$0xff]  ;;  %s1679_s10 = smov [#allocation9]  }
  0x30   :  { %1276 = vmatprep.subr.bf16.mxu1 %v1675_v0  ;;  %v109_v29 = vunpack.c.l.bf16 %v107_v28  ;;  %v110_v36 = vunpack.c.h.bf16 %v107_v28  ;;  %v1848_v45 = vld [vmem:[%s2112_s3] ss:$0 sm:$0xff]  ;;  %v111_v49 = vunpack.c.l.bf16 %v1850_v46  ;;  %v348_v61 = vunpack.c.l.bf16 %v346_v60  ;;  %s1678_s3 = smov [#allocation10]   ;;  %s1132_s11 = sshll.u32 %s1679_s10, 4  ;;  %s1133_s11 = int_to_ptr.vmem [resolvable:$true] %s1132_s11 }
  0x31   :  { %246 = vmatpush1.bf16.msra.mxu0 %v1739_v7  ;;  %s1145_s9 = sshll.u32 %s1678_s3, 4  ;;  %s1146_s9 = int_to_ptr.vmem [resolvable:$true] %s1145_s9 }
  0x32   :  { %247 = vmatprep.subr.bf16.mxu0 %v1742_v8  ;;  %s1622_s12 = scalar_lea.vmem %s1146_s9, 128  ;;  %p1627_p2 = scmp.lt.s32.totalorder %s1146_s9, %s1146_s9 }
  0x33   :  { %1277 = vmatpush3.bf16.msra.mxu1 %v1763_v15  ;;  %p1623_p1 = scmp.ne.s32.totalorder %s1146_s9, %s1622_s12  ;;  %p1628_p3 = scmp.lt.s32.totalorder %s1622_s12, %s1622_s12 }
  0x34   :  { %1278 = vmatprep.subr.bf16.mxu1 %v1675_v0 }
  0x35   :  { %248 = vmatpush1.bf16.msra.mxu0 %v1747_v10  ;;  %p1629_p4 = por %p1628_p3, %p1627_p2 }
  0x36   :  { %249 = vmatprep.subr.bf16.mxu0 %v1750_v11 }
  0x37   :  { %1279 = vmatpush3.bf16.msra.mxu1 %v1773_v18  ;;  %p1630_p5 = pnand %p1629_p4, %p1623_p1 }
  0x38   :  { %1280 = vmatprep.subr.bf16.mxu1 %v1675_v0 }
  0x39   :  { %250 = vmatpush1.bf16.msra.mxu0 %v1756_v13 }
  0x3a   :  { %251 = vmatprep.subr.bf16.mxu0 %v1759_v14 }
  0x3b   :  { %1281 = vmatpush3.bf16.msra.mxu1 %v1783_v21 }
  0x3c   :  { %1282 = vmatprep.subr.bf16.mxu1 %v1675_v0 }
  0x3d   :  { %252 = vmatpush1.bf16.msra.mxu0 %v1767_v16 }
  0x3e   :  { %253 = vmatprep.subr.bf16.mxu0 %v1770_v17 }
  0x3f   :  { %1283 = vmatpush3.bf16.msra.mxu1 %v1793_v24 }
  0x40   :  { %1284 = vmatprep.subr.bf16.mxu1 %v1675_v0 }
  0x41   :  { %254 = vmatpush1.bf16.msra.mxu0 %v1777_v19 }
  0x42   :  { %255 = vmatprep.subr.bf16.mxu0 %v1780_v20 }
  0x43   :  { %1285 = vmatpush3.bf16.msra.mxu1 %v1800_v26 }
  0x44   :  { %1286 = vmatprep.subr.bf16.mxu1 %v1675_v0 }
  0x45   :  { %256 = vmatpush1.bf16.msra.mxu0 %v1787_v22 }
  0x46   :  { %351 = vmatprep.subr.bf16.mxu0 %v1725_v2 }
  0x47   :  { %1287 = vmatpush3.bf16.msra.mxu1 %v1807_v27 }
  0x48   :  { %274 = vmatmul.mubr.bf16.vlgmr.msra.gmra.mxu0 %v112_v25  ;;  %1292 = vmatprep.subr.bf16.mxu1 %v1675_v0 }
  0x49   :  { %352 = vmatpush1.bf16.msra.mxu0 %v1727_v3  ;;  %383 = vmatprep.mubr.bf16.mxu0 %v1676_v1 }
  0x4a   :  { %353 = vmatprep.subr.bf16.mxu0 %v1730_v4  ;;  %1289 = vmatmul.mubr.bf16.vlgmr.msra.gmra.mxu1 %v112_v25 }
  0x4b   :  { %1293 = vmatpush3.bf16.msra.mxu1 %v1744_v9  ;;  %1308 = vmatprep.mubr.msk.bf16.mxu1 %vm1677_vm0, %v1675_v0 }
  0x4c   :  { %1294 = vmatprep.subr.bf16.mxu1 %v1675_v0 }
  0x4d   :  { %354 = vmatpush1.bf16.msra.mxu0 %v1733_v5 }
  0x4e   :  { %355 = vmatprep.subr.bf16.mxu0 %v1736_v6 }
  0x4f   :  { %1295 = vmatpush3.bf16.msra.mxu1 %v1753_v12 }
  0x50   :  { %1296 = vmatprep.subr.bf16.mxu1 %v1675_v0 }
  0x51   :  { %356 = vmatpush1.bf16.msra.mxu0 %v1739_v7 }
  0x52   :  { %357 = vmatprep.subr.bf16.mxu0 %v1742_v8 }
  0x53   :  { %1297 = vmatpush3.bf16.msra.mxu1 %v1763_v15 }
  0x54   :  { %1298 = vmatprep.subr.bf16.mxu1 %v1675_v0 }
  0x55   :  { %358 = vmatpush1.bf16.msra.mxu0 %v1747_v10 }
  0x56   :  { %359 = vmatprep.subr.bf16.mxu0 %v1750_v11 }
  0x57   :  { %1299 = vmatpush3.bf16.msra.mxu1 %v1773_v18 }
  0x58   :  { %1300 = vmatprep.subr.bf16.mxu1 %v1675_v0 }
  0x59   :  { %360 = vmatpush1.bf16.msra.mxu0 %v1756_v13 }
  0x5a   :  { %361 = vmatprep.subr.bf16.mxu0 %v1759_v14 }
  0x5b   :  { %1301 = vmatpush3.bf16.msra.mxu1 %v1783_v21 }
  0x5c   :  { %1302 = vmatprep.subr.bf16.mxu1 %v1675_v0 }
  0x5d   :  { %362 = vmatpush1.bf16.msra.mxu0 %v1767_v16 }
  0x5e   :  { %363 = vmatprep.subr.bf16.mxu0 %v1770_v17 }
  0x5f   :  { %1303 = vmatpush3.bf16.msra.mxu1 %v1793_v24 }
  0x60   :  { %1304 = vmatprep.subr.bf16.mxu1 %v1675_v0 }
  0x61   :  { %364 = vmatpush1.bf16.msra.mxu0 %v1777_v19 }
  0x62   :  { %365 = vmatprep.subr.bf16.mxu0 %v1780_v20 }
  0x63   :  { %1305 = vmatpush3.bf16.msra.mxu1 %v1800_v26 }
  0x64   :  { %1306 = vmatprep.subr.bf16.mxu1 %v1675_v0 }
  0x65   :  { %366 = vmatpush1.bf16.msra.mxu0 %v1787_v22 }
  0x66   :  { %462 = vmatprep.subr.bf16.mxu0 %v1725_v2 }
  0x67   :  { %1307 = vmatpush3.bf16.msra.mxu1 %v1807_v27 }
  0x68   :  { %1312 = vmatprep.subr.bf16.mxu1 %v1675_v0 }
 0x108   :  { %v275_v30 = vpop.f32.mrf.mxu0 }
 0x109   :  { %v322_v31 = vadd.f32 %v275_v30, %v109_v29 }
 0x10a   :  { %v277_v32 = vpop.f32.mrf.mxu0  ;;  %v316_v37 = vpop.f32.mrf.mxu1 }
 0x10b   :  { %v1184_v33 = vmul.f32 -1.442695, %v322_v31  ;;  %v329_v39 = vadd.f32 %v277_v32, %v110_v36  ;;  %v336_v47 = vadd.f32 %v1848_v45, %v316_v37 }
 0x10c   :  { %v279_v34 = vpop.f32.mrf.mxu0  ;;  %v1290_v38 = vpop.f32.mrf.mxu1 }
 0x10d   :  { %1476 = vpow2.f32 %v1184_v33  ;;  %v1185_v42 = vmul.f32 -1.442695, %v329_v39  ;;  %v349_v34 = vunpack.c.h.bf16 %v346_v60 }
 0x10e   :  { %v280_v35 = vpop.f32.mrf.mxu0  ;;  %v319_v40 = vpop.f32.mrf.mxu1 }
 0x10f   :  { %1478 = vpow2.f32 %v1185_v42  ;;  %v350_v40 = vunpack.c.h.bf16 %v1850_v46  ;;  %v457_v46 = vld [vmem:[#allocation3 + $0x18] sm:$0xff] }
 0x110   :  { %v1291_v41 = vpop.f32.mrf.mxu1 }
 0x11a   :  { %v1477_v43 = vpop.eup %1476 }
 0x11b   :  { %v326_v44 = vadd.f32 1.0, %v1477_v43 }
 0x11c   :  { %v1479_v48 = vpop.eup %1478 }
 0x11d   :  { %1480 = vrcp.f32 %v326_v44  ;;  %v333_v52 = vadd.f32 1.0, %v1479_v48 }
 0x12a   :  { %v1481_v50 = vpop.eup %1480 }
 0x12b   :  { %v337_v51 = vmul.f32 %v1481_v50, %v336_v47 }
 0x12d   :  { %v338_v53 = vadd.f32 %v337_v51, %v111_v49 }
 0x12f   :  { %1482 = vtanh.f32 %v338_v53 }
 0x130   :  { %1484 = vrcp.f32 %v333_v52 }
 0x13c   :  { %v1483_v54 = vpop.eup %1482 }
 0x13d   :  { %v340_v55 = vsub.f32 %v1789_v23, %v1483_v54  ;;  %v1485_v56 = vpop.eup %1484 }
 0x13f   :  { %v341_v57 = vmul.f32 %v1485_v56, %v340_v55 }
 0x141   :  { %v1855_v58 = vadd.f32 %v1483_v54, %v341_v57  ;;  %v459_v54 = vunpack.c.l.bf16 %v457_v46 }
 0x143   :  { %v343_v59 = vpack.c.bf16 %v1855_v58, %v1855_v58 }
 0x145   :  { %344 = vst [vmem:[#allocation9] sm:$0xf] %v343_v59  ;;  %384 = vmatmul.mubr.bf16.vlgmr.msra.gmra.mxu0 %v343_v59  ;;  %1309 = vmatmul.mubr.bf16.vlgmr.msra.gmra.mxu1 %v343_v59 }
 0x146   :  { %463 = vmatpush1.bf16.msra.mxu0 %v1727_v3  ;;  %1313 = vmatpush3.bf16.msra.mxu1 %v1744_v9 }
 0x147   :  { %464 = vmatprep.subr.bf16.mxu0 %v1730_v4  ;;  %1314 = vmatprep.subr.bf16.mxu1 %v1675_v0 }
 0x148   :  { %494 = vmatprep.mubr.bf16.mxu0 %v1676_v1  ;;  %1328 = vmatprep.mubr.msk.bf16.mxu1 %vm1677_vm0, %v1675_v0 }
 0x14a   :  { %465 = vmatpush1.bf16.msra.mxu0 %v1733_v5  ;;  %1315 = vmatpush3.bf16.msra.mxu1 %v1753_v12 }
 0x14b   :  { %466 = vmatprep.subr.bf16.mxu0 %v1736_v6  ;;  %1316 = vmatprep.subr.bf16.mxu1 %v1675_v0 }
 0x14e   :  { %467 = vmatpush1.bf16.msra.mxu0 %v1739_v7  ;;  %1317 = vmatpush3.bf16.msra.mxu1 %v1763_v15 }
 0x14f   :  { %468 = vmatprep.subr.bf16.mxu0 %v1742_v8  ;;  %1318 = vmatprep.subr.bf16.mxu1 %v1675_v0 }
 0x152   :  { %469 = vmatpush1.bf16.msra.mxu0 %v1747_v10  ;;  %1319 = vmatpush3.bf16.msra.mxu1 %v1773_v18 }
 0x153   :  { %470 = vmatprep.subr.bf16.mxu0 %v1750_v11  ;;  %1320 = vmatprep.subr.bf16.mxu1 %v1675_v0 }
 0x156   :  { %471 = vmatpush1.bf16.msra.mxu0 %v1756_v13  ;;  %1321 = vmatpush3.bf16.msra.mxu1 %v1783_v21 }
 0x157   :  { %472 = vmatprep.subr.bf16.mxu0 %v1759_v14  ;;  %1322 = vmatprep.subr.bf16.mxu1 %v1675_v0 }
 0x15a   :  { %473 = vmatpush1.bf16.msra.mxu0 %v1767_v16  ;;  %1323 = vmatpush3.bf16.msra.mxu1 %v1793_v24 }
 0x15b   :  { %474 = vmatprep.subr.bf16.mxu0 %v1770_v17  ;;  %1324 = vmatprep.subr.bf16.mxu1 %v1675_v0 }
 0x15e   :  { %475 = vmatpush1.bf16.msra.mxu0 %v1777_v19  ;;  %1325 = vmatpush3.bf16.msra.mxu1 %v1800_v26 }
 0x15f   :  { %476 = vmatprep.subr.bf16.mxu0 %v1780_v20  ;;  %1326 = vmatprep.subr.bf16.mxu1 %v1675_v0 }
 0x162   :  { %477 = vmatpush1.bf16.msra.mxu0 %v1787_v22  ;;  %1327 = vmatpush3.bf16.msra.mxu1 %v1807_v27 }
 0x163   :  { %573 = vmatprep.subr.bf16.mxu0 %v1725_v2  ;;  %1332 = vmatprep.subr.bf16.mxu1 %v1675_v0 }
 0x205   :  { %v385_v62 = vpop.f32.mrf.mxu0  ;;  %v426_v63 = vpop.f32.mrf.mxu1 }
 0x206   :  { %v432_v23 = vadd.f32 %v385_v62, %v348_v61  ;;  %v446_v41 = vadd.f32 %v1848_v45, %v426_v63 }
 0x207   :  { %v387_v25 = vpop.f32.mrf.mxu0  ;;  %v1310_v28 = vpop.f32.mrf.mxu1 }
 0x208   :  { %v1186_v29 = vmul.f32 -1.442695, %v432_v23  ;;  %v439_v35 = vadd.f32 %v387_v25, %v349_v34  ;;  %v460_v25 = vunpack.c.h.bf16 %v457_v46 }
 0x209   :  { %v389_v30 = vpop.f32.mrf.mxu0  ;;  %v429_v31 = vpop.f32.mrf.mxu1 }
 0x20a   :  { %1486 = vpow2.f32 %v1186_v29  ;;  %v1187_v36 = vmul.f32 -1.442695, %v439_v35 }
 0x20b   :  { %v390_v32 = vpop.f32.mrf.mxu0  ;;  %v1311_v33 = vpop.f32.mrf.mxu1 }
 0x20c   :  { %1488 = vpow2.f32 %v1187_v36  ;;  %v1936_v32 = vld [vmem:[#allocation3 + $0x20] ss:$12 sps:$4 sm:$0xff]  }
 0x20d   :  { %v461_v34 = vunpack.c.l.bf16 %v1936_v32 }
 0x217   :  { %v1487_v37 = vpop.eup %1486 }
 0x218   :  { %v436_v38 = vadd.f32 1.0, %v1487_v37 }
 0x219   :  { %v1489_v39 = vpop.eup %1488 }
 0x21a   :  { %1490 = vrcp.f32 %v436_v38  ;;  %v443_v47 = vadd.f32 1.0, %v1489_v39 }
 0x227   :  { %v1491_v42 = vpop.eup %1490 }
 0x228   :  { %v447_v43 = vmul.f32 %v1491_v42, %v446_v41 }
 0x22a   :  { %v448_v44 = vadd.f32 %v447_v43, %v350_v40 }
 0x22c   :  { %1492 = vtanh.f32 %v448_v44 }
 0x22d   :  { %1494 = vrcp.f32 %v443_v47 }
 0x239   :  { %v1493_v48 = vpop.eup %1492 }
 0x23a   :  { %v450_v49 = vsub.f32 %v1855_v58, %v1493_v48  ;;  %v1495_v50 = vpop.eup %1494 }
 0x23c   :  { %v451_v51 = vmul.f32 %v1495_v50, %v450_v49 }
 0x23e   :  { %v1897_v52 = vadd.f32 %v1493_v48, %v451_v51  ;;  %v568_v48 = vld [vmem:[#allocation3 + $0x24] sm:$0xff] }
 0x23f   :  { %v570_v49 = vunpack.c.l.bf16 %v568_v48 }
 0x240   :  { %v453_v53 = vpack.c.bf16 %v1897_v52, %v1897_v52 }
 0x242   :  { %455 = vst [vmem:[#allocation9 + $0x4] sm:$0xf] %v453_v53  ;;  %495 = vmatmul.mubr.bf16.vlgmr.msra.gmra.mxu0 %v453_v53  ;;  %1329 = vmatmul.mubr.bf16.vlgmr.msra.gmra.mxu1 %v453_v53 }
 0x243   :  { %574 = vmatpush1.bf16.msra.mxu0 %v1727_v3  ;;  %1333 = vmatpush3.bf16.msra.mxu1 %v1744_v9 }
 0x244   :  { %575 = vmatprep.subr.bf16.mxu0 %v1730_v4  ;;  %1334 = vmatprep.subr.bf16.mxu1 %v1675_v0 }
 0x245   :  { %605 = vmatprep.mubr.bf16.mxu0 %v1676_v1  ;;  %1348 = vmatprep.mubr.msk.bf16.mxu1 %vm1677_vm0, %v1675_v0 }
 0x247   :  { %576 = vmatpush1.bf16.msra.mxu0 %v1733_v5  ;;  %1335 = vmatpush3.bf16.msra.mxu1 %v1753_v12 }
 0x248   :  { %577 = vmatprep.subr.bf16.mxu0 %v1736_v6  ;;  %1336 = vmatprep.subr.bf16.mxu1 %v1675_v0 }
 0x24b   :  { %578 = vmatpush1.bf16.msra.mxu0 %v1739_v7  ;;  %1337 = vmatpush3.bf16.msra.mxu1 %v1763_v15 }
 0x24c   :  { %579 = vmatprep.subr.bf16.mxu0 %v1742_v8  ;;  %1338 = vmatprep.subr.bf16.mxu1 %v1675_v0 }
 0x24f   :  { %580 = vmatpush1.bf16.msra.mxu0 %v1747_v10  ;;  %1339 = vmatpush3.bf16.msra.mxu1 %v1773_v18 }
 0x250   :  { %581 = vmatprep.subr.bf16.mxu0 %v1750_v11  ;;  %1340 = vmatprep.subr.bf16.mxu1 %v1675_v0 }
 0x253   :  { %582 = vmatpush1.bf16.msra.mxu0 %v1756_v13  ;;  %1341 = vmatpush3.bf16.msra.mxu1 %v1783_v21 }
 0x254   :  { %583 = vmatprep.subr.bf16.mxu0 %v1759_v14  ;;  %1342 = vmatprep.subr.bf16.mxu1 %v1675_v0 }
 0x257   :  { %584 = vmatpush1.bf16.msra.mxu0 %v1767_v16  ;;  %1343 = vmatpush3.bf16.msra.mxu1 %v1793_v24 }
 0x258   :  { %585 = vmatprep.subr.bf16.mxu0 %v1770_v17  ;;  %1344 = vmatprep.subr.bf16.mxu1 %v1675_v0 }
 0x25b   :  { %586 = vmatpush1.bf16.msra.mxu0 %v1777_v19  ;;  %1345 = vmatpush3.bf16.msra.mxu1 %v1800_v26 }
 0x25c   :  { %587 = vmatprep.subr.bf16.mxu0 %v1780_v20  ;;  %1346 = vmatprep.subr.bf16.mxu1 %v1675_v0 }
 0x25f   :  { %588 = vmatpush1.bf16.msra.mxu0 %v1787_v22  ;;  %1347 = vmatpush3.bf16.msra.mxu1 %v1807_v27 }
 0x260   :  { %684 = vmatprep.subr.bf16.mxu0 %v1725_v2  ;;  %1352 = vmatprep.subr.bf16.mxu1 %v1675_v0 }
 0x302   :  { %v496_v55 = vpop.f32.mrf.mxu0  ;;  %v537_v56 = vpop.f32.mrf.mxu1 }
 0x303   :  { %v543_v57 = vadd.f32 %v496_v55, %v459_v54  ;;  %v557_v35 = vadd.f32 %v1848_v45, %v537_v56 }
 0x304   :  { %v498_v58 = vpop.f32.mrf.mxu0  ;;  %v1330_v59 = vpop.f32.mrf.mxu1 }
 0x305   :  { %v1188_v60 = vmul.f32 -1.442695, %v543_v57  ;;  %v550_v28 = vadd.f32 %v498_v58, %v460_v25  ;;  %v571_v59 = vunpack.c.h.bf16 %v568_v48  ;;  %v572_v25 = vunpack.c.h.bf16 %v1936_v32  ;;  %v679_v32 = vld [vmem:[#allocation3 + $0x30] sm:$0xff] }
 0x306   :  { %v500_v61 = vpop.f32.mrf.mxu0  ;;  %v540_v62 = vpop.f32.mrf.mxu1 }
 0x307   :  { %1496 = vpow2.f32 %v1188_v60  ;;  %v1189_v29 = vmul.f32 -1.442695, %v550_v28 }
 0x308   :  { %v501_v63 = vpop.f32.mrf.mxu0  ;;  %v1331_v23 = vpop.f32.mrf.mxu1 }
 0x309   :  { %1498 = vpow2.f32 %v1189_v29 }
 0x314   :  { %v1497_v30 = vpop.eup %1496 }
 0x315   :  { %v547_v31 = vadd.f32 1.0, %v1497_v30 }
 0x316   :  { %v1499_v33 = vpop.eup %1498 }
 0x317   :  { %1500 = vrcp.f32 %v547_v31  ;;  %v554_v39 = vadd.f32 1.0, %v1499_v33 }
 0x324   :  { %v1501_v36 = vpop.eup %1500 }
 0x325   :  { %v558_v37 = vmul.f32 %v1501_v36, %v557_v35 }
 0x327   :  { %v559_v38 = vadd.f32 %v558_v37, %v461_v34 }
 0x329   :  { %1502 = vtanh.f32 %v559_v38 }
 0x32a   :  { %1504 = vrcp.f32 %v554_v39 }
 0x336   :  { %v1503_v40 = vpop.eup %1502 }
 0x337   :  { %v561_v41 = vsub.f32 %v1897_v52, %v1503_v40  ;;  %v1505_v42 = vpop.eup %1504 }
 0x339   :  { %v562_v43 = vmul.f32 %v1505_v42, %v561_v41 }
 0x33b   :  { %v1941_v44 = vadd.f32 %v1503_v40, %v562_v43  ;;  %v681_v40 = vunpack.c.l.bf16 %v679_v32 }
 0x33d   :  { %v564_v47 = vpack.c.bf16 %v1941_v44, %v1941_v44 }
 0x33f   :  { %566 = vst [vmem:[#allocation9 + $0x8] sm:$0xf] %v564_v47  ;;  %606 = vmatmul.mubr.bf16.vlgmr.msra.gmra.mxu0 %v564_v47  ;;  %1349 = vmatmul.mubr.bf16.vlgmr.msra.gmra.mxu1 %v564_v47 }
 0x340   :  { %685 = vmatpush1.bf16.msra.mxu0 %v1727_v3  ;;  %1353 = vmatpush3.bf16.msra.mxu1 %v1744_v9 }
 0x341   :  { %686 = vmatprep.subr.bf16.mxu0 %v1730_v4  ;;  %1354 = vmatprep.subr.bf16.mxu1 %v1675_v0 }
 0x342   :  { %716 = vmatprep.mubr.bf16.mxu0 %v1676_v1  ;;  %1368 = vmatprep.mubr.msk.bf16.mxu1 %vm1677_vm0, %v1675_v0 }
 0x344   :  { %687 = vmatpush1.bf16.msra.mxu0 %v1733_v5  ;;  %1355 = vmatpush3.bf16.msra.mxu1 %v1753_v12 }
 0x345   :  { %688 = vmatprep.subr.bf16.mxu0 %v1736_v6  ;;  %1356 = vmatprep.subr.bf16.mxu1 %v1675_v0 }
 0x348   :  { %689 = vmatpush1.bf16.msra.mxu0 %v1739_v7  ;;  %1357 = vmatpush3.bf16.msra.mxu1 %v1763_v15 }
 0x349   :  { %690 = vmatprep.subr.bf16.mxu0 %v1742_v8  ;;  %1358 = vmatprep.subr.bf16.mxu1 %v1675_v0 }
 0x34c   :  { %691 = vmatpush1.bf16.msra.mxu0 %v1747_v10  ;;  %1359 = vmatpush3.bf16.msra.mxu1 %v1773_v18 }
 0x34d   :  { %692 = vmatprep.subr.bf16.mxu0 %v1750_v11  ;;  %1360 = vmatprep.subr.bf16.mxu1 %v1675_v0 }
 0x350   :  { %693 = vmatpush1.bf16.msra.mxu0 %v1756_v13  ;;  %1361 = vmatpush3.bf16.msra.mxu1 %v1783_v21 }
 0x351   :  { %694 = vmatprep.subr.bf16.mxu0 %v1759_v14  ;;  %1362 = vmatprep.subr.bf16.mxu1 %v1675_v0 }
 0x354   :  { %695 = vmatpush1.bf16.msra.mxu0 %v1767_v16  ;;  %1363 = vmatpush3.bf16.msra.mxu1 %v1793_v24 }
 0x355   :  { %696 = vmatprep.subr.bf16.mxu0 %v1770_v17  ;;  %1364 = vmatprep.subr.bf16.mxu1 %v1675_v0 }
 0x358   :  { %697 = vmatpush1.bf16.msra.mxu0 %v1777_v19  ;;  %1365 = vmatpush3.bf16.msra.mxu1 %v1800_v26 }
 0x359   :  { %698 = vmatprep.subr.bf16.mxu0 %v1780_v20  ;;  %1366 = vmatprep.subr.bf16.mxu1 %v1675_v0 }
 0x35c   :  { %699 = vmatpush1.bf16.msra.mxu0 %v1787_v22  ;;  %1367 = vmatpush3.bf16.msra.mxu1 %v1807_v27 }
 0x35d   :  { %795 = vmatprep.subr.bf16.mxu0 %v1725_v2  ;;  %1372 = vmatprep.subr.bf16.mxu1 %v1675_v0 }
 0x3ff   :  { %v607_v50 = vpop.f32.mrf.mxu0  ;;  %v648_v51 = vpop.f32.mrf.mxu1 }
 0x400   :  { %v654_v52 = vadd.f32 %v607_v50, %v570_v49  ;;  %v668_v28 = vadd.f32 %v1848_v45, %v648_v51 }
 0x401   :  { %v609_v53 = vpop.f32.mrf.mxu0  ;;  %v1350_v46 = vpop.f32.mrf.mxu1 }
 0x402   :  { %v1190_v54 = vmul.f32 -1.442695, %v654_v52  ;;  %v661_v60 = vadd.f32 %v609_v53, %v571_v59  ;;  %v682_v53 = vunpack.c.h.bf16 %v679_v32 }
 0x403   :  { %v611_v55 = vpop.f32.mrf.mxu0  ;;  %v651_v56 = vpop.f32.mrf.mxu1 }
 0x404   :  { %1506 = vpow2.f32 %v1190_v54  ;;  %v1191_v61 = vmul.f32 -1.442695, %v661_v60 }
 0x405   :  { %v612_v57 = vpop.f32.mrf.mxu0  ;;  %v1351_v58 = vpop.f32.mrf.mxu1 }
 0x406   :  { %1508 = vpow2.f32 %v1191_v61  ;;  %v2022_v57 = vld [vmem:[#allocation3 + $0x38] ss:$12 sps:$4 sm:$0xff]  }
 0x407   :  { %v683_v59 = vunpack.c.l.bf16 %v2022_v57 }
 0x411   :  { %v1507_v62 = vpop.eup %1506 }
 0x412   :  { %v658_v63 = vadd.f32 1.0, %v1507_v62 }
 0x413   :  { %v1509_v23 = vpop.eup %1508 }
 0x414   :  { %1510 = vrcp.f32 %v658_v63  ;;  %v665_v33 = vadd.f32 1.0, %v1509_v23 }
 0x421   :  { %v1511_v29 = vpop.eup %1510 }
 0x422   :  { %v669_v30 = vmul.f32 %v1511_v29, %v668_v28 }
 0x424   :  { %v670_v31 = vadd.f32 %v669_v30, %v572_v25 }
 0x426   :  { %1512 = vtanh.f32 %v670_v31 }
 0x427   :  { %1514 = vrcp.f32 %v665_v33 }
 0x433   :  { %v1513_v34 = vpop.eup %1512 }
 0x434   :  { %v672_v35 = vsub.f32 %v1941_v44, %v1513_v34  ;;  %v1515_v36 = vpop.eup %1514 }
 0x436   :  { %v673_v37 = vmul.f32 %v1515_v36, %v672_v35 }
 0x438   :  { %v1983_v38 = vadd.f32 %v1513_v34, %v673_v37 }
 0x43a   :  { %v675_v39 = vpack.c.bf16 %v1983_v38, %v1983_v38 }
 0x43c   :  { %677 = vst [vmem:[#allocation9 + $0xc] sm:$0xf] %v675_v39  ;;  %717 = vmatmul.mubr.bf16.vlgmr.msra.gmra.mxu0 %v675_v39  ;;  %1369 = vmatmul.mubr.bf16.vlgmr.msra.gmra.mxu1 %v675_v39 }
 0x43d   :  { %796 = vmatpush1.bf16.msra.mxu0 %v1727_v3  ;;  %1373 = vmatpush3.bf16.msra.mxu1 %v1744_v9 }
 0x43e   :  { %797 = vmatprep.subr.bf16.mxu0 %v1730_v4  ;;  %1374 = vmatprep.subr.bf16.mxu1 %v1675_v0 }
 0x43f   :  { %827 = vmatprep.mubr.bf16.mxu0 %v1676_v1  ;;  %1388 = vmatprep.mubr.msk.bf16.mxu1 %vm1677_vm0, %v1675_v0 }
 0x441   :  { %798 = vmatpush1.bf16.msra.mxu0 %v1733_v5  ;;  %1375 = vmatpush3.bf16.msra.mxu1 %v1753_v12 }
 0x442   :  { %799 = vmatprep.subr.bf16.mxu0 %v1736_v6  ;;  %1376 = vmatprep.subr.bf16.mxu1 %v1675_v0 }
 0x445   :  { %800 = vmatpush1.bf16.msra.mxu0 %v1739_v7  ;;  %1377 = vmatpush3.bf16.msra.mxu1 %v1763_v15 }
 0x446   :  { %801 = vmatprep.subr.bf16.mxu0 %v1742_v8  ;;  %1378 = vmatprep.subr.bf16.mxu1 %v1675_v0 }
 0x449   :  { %802 = vmatpush1.bf16.msra.mxu0 %v1747_v10  ;;  %1379 = vmatpush3.bf16.msra.mxu1 %v1773_v18 }
 0x44a   :  { %803 = vmatprep.subr.bf16.mxu0 %v1750_v11  ;;  %1380 = vmatprep.subr.bf16.mxu1 %v1675_v0 }
 0x44d   :  { %804 = vmatpush1.bf16.msra.mxu0 %v1756_v13  ;;  %1381 = vmatpush3.bf16.msra.mxu1 %v1783_v21 }
 0x44e   :  { %805 = vmatprep.subr.bf16.mxu0 %v1759_v14  ;;  %1382 = vmatprep.subr.bf16.mxu1 %v1675_v0 }
 0x451   :  { %806 = vmatpush1.bf16.msra.mxu0 %v1767_v16  ;;  %1383 = vmatpush3.bf16.msra.mxu1 %v1793_v24 }
 0x452   :  { %807 = vmatprep.subr.bf16.mxu0 %v1770_v17  ;;  %1384 = vmatprep.subr.bf16.mxu1 %v1675_v0 }
 0x455   :  { %808 = vmatpush1.bf16.msra.mxu0 %v1777_v19  ;;  %1385 = vmatpush3.bf16.msra.mxu1 %v1800_v26 }
 0x456   :  { %809 = vmatprep.subr.bf16.mxu0 %v1780_v20  ;;  %1386 = vmatprep.subr.bf16.mxu1 %v1675_v0 }
 0x459   :  { %810 = vmatpush1.bf16.msra.mxu0 %v1787_v22  ;;  %1387 = vmatpush3.bf16.msra.mxu1 %v1807_v27 }
 0x45a   :  { %906 = vmatprep.subr.bf16.mxu0 %v1725_v2  ;;  %1392 = vmatprep.subr.bf16.mxu1 %v1675_v0 }
 0x4fc   :  { %v718_v41 = vpop.f32.mrf.mxu0  ;;  %v759_v42 = vpop.f32.mrf.mxu1 }
 0x4fd   :  { %v765_v43 = vadd.f32 %v718_v41, %v681_v40  ;;  %v779_v60 = vadd.f32 %v1848_v45, %v759_v42 }
 0x4fe   :  { %v720_v44 = vpop.f32.mrf.mxu0  ;;  %v1370_v47 = vpop.f32.mrf.mxu1 }
 0x4ff   :  { %v1192_v48 = vmul.f32 -1.442695, %v765_v43  ;;  %v772_v46 = vadd.f32 %v720_v44, %v682_v53  ;;  %v794_v44 = vunpack.c.h.bf16 %v2022_v57  ;;  %v1556_v57 = vld [vmem:[#allocation8 + $0xa8] ss:$12 sps:$4 sm:$0xff]  }
 0x500   :  { %v722_v49 = vpop.f32.mrf.mxu0  ;;  %v762_v50 = vpop.f32.mrf.mxu1 }
 0x501   :  { %1516 = vpow2.f32 %v1192_v48  ;;  %v1193_v54 = vmul.f32 -1.442695, %v772_v46 }
 0x502   :  { %v723_v51 = vpop.f32.mrf.mxu0  ;;  %v1371_v52 = vpop.f32.mrf.mxu1 }
 0x503   :  { %1518 = vpow2.f32 %v1193_v54 }
 0x50e   :  { %v1517_v55 = vpop.eup %1516 }
 0x50f   :  { %v769_v56 = vadd.f32 1.0, %v1517_v55 }
 0x510   :  { %v1519_v58 = vpop.eup %1518 }
 0x511   :  { %1520 = vrcp.f32 %v769_v56  ;;  %v776_v23 = vadd.f32 1.0, %v1519_v58  ;;  %v1557_v58 = vld [vmem:[#allocation8 + $0x94] ss:$12 sps:$4 sm:$0xff]  }
 0x51e   :  { %v1521_v61 = vpop.eup %1520 }
 0x51f   :  { %v780_v62 = vmul.f32 %v1521_v61, %v779_v60  ;;  %v1559_v60 = vld [vmem:[#allocation8 + $0x7c] ss:$12 sps:$4 sm:$0xff]   ;;  %v1560_v61 = vld [vmem:[#allocation8 + $0x78] ss:$12 sps:$4 sm:$0xff]  }
 0x521   :  { %v781_v63 = vadd.f32 %v780_v62, %v683_v59  ;;  %v1558_v59 = vld [vmem:[#allocation8 + $0x90] ss:$12 sps:$4 sm:$0xff]  }
 0x523   :  { %1522 = vtanh.f32 %v781_v63 }
 0x524   :  { %1524 = vrcp.f32 %v776_v23 }
 0x530   :  { %v1523_v25 = vpop.eup %1522 }
 0x531   :  { %v783_v28 = vsub.f32 %v1983_v38, %v1523_v25  ;;  %v1525_v29 = vpop.eup %1524 }
 0x533   :  { %v784_v30 = vmul.f32 %v1525_v29, %v783_v28 }
 0x535   :  { %v2027_v31 = vadd.f32 %v1523_v25, %v784_v30 }
 0x537   :  { %v786_v33 = vpack.c.bf16 %v2027_v31, %v2027_v31 }
 0x539   :  { %788 = vst [vmem:[#allocation9 + $0x10] sm:$0xf] %v786_v33  ;;  %828 = vmatmul.mubr.bf16.vlgmr.msra.gmra.mxu0 %v786_v33  ;;  %1389 = vmatmul.mubr.bf16.vlgmr.msra.gmra.mxu1 %v786_v33 }
 0x53a   :  { %907 = vmatpush1.bf16.msra.mxu0 %v1727_v3  ;;  %1393 = vmatpush3.bf16.msra.mxu1 %v1744_v9  ;;  %v790_v3 = vld [vmem:[#allocation3 + $0x3c] sm:$0xff] }
 0x53b   :  { %908 = vmatprep.subr.bf16.mxu0 %v1730_v4  ;;  %1394 = vmatprep.subr.bf16.mxu1 %v1675_v0  ;;  %v792_v4 = vunpack.c.l.bf16 %v790_v3  ;;  %v793_v32 = vunpack.c.h.bf16 %v790_v3 }
 0x53c   :  { %938 = vmatprep.mubr.bf16.mxu0 %v1676_v1  ;;  %1408 = vmatprep.mubr.msk.bf16.mxu1 %vm1677_vm0, %v1675_v0 }
 0x53e   :  { %909 = vmatpush1.bf16.msra.mxu0 %v1733_v5  ;;  %1395 = vmatpush3.bf16.msra.mxu1 %v1753_v12 }
 0x53f   :  { %910 = vmatprep.subr.bf16.mxu0 %v1736_v6  ;;  %1396 = vmatprep.subr.bf16.mxu1 %v1675_v0 }
 0x542   :  { %911 = vmatpush1.bf16.msra.mxu0 %v1739_v7  ;;  %1397 = vmatpush3.bf16.msra.mxu1 %v1763_v15 }
 0x543   :  { %912 = vmatprep.subr.bf16.mxu0 %v1742_v8  ;;  %1398 = vmatprep.subr.bf16.mxu1 %v1675_v0 }
 0x546   :  { %913 = vmatpush1.bf16.msra.mxu0 %v1747_v10  ;;  %1399 = vmatpush3.bf16.msra.mxu1 %v1773_v18 }
 0x547   :  { %914 = vmatprep.subr.bf16.mxu0 %v1750_v11  ;;  %1400 = vmatprep.subr.bf16.mxu1 %v1675_v0 }
 0x54a   :  { %915 = vmatpush1.bf16.msra.mxu0 %v1756_v13  ;;  %1401 = vmatpush3.bf16.msra.mxu1 %v1783_v21 }
 0x54b   :  { %916 = vmatprep.subr.bf16.mxu0 %v1759_v14  ;;  %1402 = vmatprep.subr.bf16.mxu1 %v1675_v0 }
 0x54e   :  { %917 = vmatpush1.bf16.msra.mxu0 %v1767_v16  ;;  %1403 = vmatpush3.bf16.msra.mxu1 %v1793_v24 }
 0x54f   :  { %918 = vmatprep.subr.bf16.mxu0 %v1770_v17  ;;  %1404 = vmatprep.subr.bf16.mxu1 %v1675_v0 }
 0x552   :  { %919 = vmatpush1.bf16.msra.mxu0 %v1777_v19  ;;  %1405 = vmatpush3.bf16.msra.mxu1 %v1800_v26 }
 0x553   :  { %920 = vmatprep.subr.bf16.mxu0 %v1780_v20  ;;  %1406 = vmatprep.subr.bf16.mxu1 %v1675_v0 }
 0x556   :  { %921 = vmatpush1.bf16.msra.mxu0 %v1787_v22  ;;  %1407 = vmatpush3.bf16.msra.mxu1 %v1807_v27 }
 0x557   :  { %1017 = vmatprep.subr.bf16.mxu0 %v1725_v2  ;;  %1412 = vmatprep.subr.bf16.mxu1 %v1675_v0 }
 0x5f9   :  { %v829_v5 = vpop.f32.mrf.mxu0  ;;  %v870_v6 = vpop.f32.mrf.mxu1 }
 0x5fa   :  { %v876_v7 = vadd.f32 %v829_v5, %v792_v4  ;;  %v890_v47 = vadd.f32 %v1848_v45, %v870_v6 }
 0x5fb   :  { %v831_v8 = vpop.f32.mrf.mxu0  ;;  %v1390_v34 = vpop.f32.mrf.mxu1 }
 0x5fc   :  { %v1194_v35 = vmul.f32 -1.442695, %v876_v7  ;;  %v883_v40 = vadd.f32 %v831_v8, %v793_v32  ;;  %v1012_v7 = vld [vmem:[#allocation3 + $0x54] sm:$0xff] }
 0x5fd   :  { %v833_v36 = vpop.f32.mrf.mxu0  ;;  %v873_v37 = vpop.f32.mrf.mxu1  ;;  %v1014_v8 = vunpack.c.l.bf16 %v1012_v7 }
 0x5fe   :  { %1526 = vpow2.f32 %v1194_v35  ;;  %v1195_v41 = vmul.f32 -1.442695, %v883_v40 }
 0x5ff   :  { %v834_v38 = vpop.f32.mrf.mxu0  ;;  %v1391_v39 = vpop.f32.mrf.mxu1 }
 0x600   :  { %1528 = vpow2.f32 %v1195_v41 }
 0x60b   :  { %v1527_v42 = vpop.eup %1526 }
 0x60c   :  { %v880_v2 = vadd.f32 1.0, %v1527_v42 }
 0x60d   :  { %v1529_v43 = vpop.eup %1528 }
 0x60e   :  { %1530 = vrcp.f32 %v880_v2  ;;  %v887_v51 = vadd.f32 1.0, %v1529_v43  ;;  %v1015_v2 = vunpack.c.h.bf16 %v1012_v7 }
 0x61b   :  { %v1531_v48 = vpop.eup %1530 }
 0x61c   :  { %v891_v49 = vmul.f32 %v1531_v48, %v890_v47 }
 0x61e   :  { %v892_v50 = vadd.f32 %v891_v49, %v794_v44 }
 0x620   :  { %1532 = vtanh.f32 %v892_v50 }
 0x621   :  { %1534 = vrcp.f32 %v887_v51 }
 0x62d   :  { %v1533_v52 = vpop.eup %1532 }
 0x62e   :  { %v894_v53 = vsub.f32 %v2027_v31, %v1533_v52  ;;  %v1535_v46 = vpop.eup %1534 }
 0x630   :  { %v895_v54 = vmul.f32 %v1535_v46, %v894_v53 }
 0x632   :  { %v2069_v55 = vadd.f32 %v1533_v52, %v895_v54 }
 0x634   :  { %v897_v56 = vpack.c.bf16 %v2069_v55, %v2069_v55 }
 0x636   :  { %899 = vst [vmem:[#allocation9 + $0x14] sm:$0xf] %v897_v56  ;;  %939 = vmatmul.mubr.bf16.vlgmr.msra.gmra.mxu0 %v897_v56  ;;  %1409 = vmatmul.mubr.bf16.vlgmr.msra.gmra.mxu1 %v897_v56 }
 0x637   :  { %1018 = vmatpush1.bf16.msra.mxu0 %v1556_v57  ;;  %1413 = vmatpush3.bf16.msra.mxu1 %v1744_v9  ;;  %v1561_v9 = vld [vmem:[#allocation8 + $0x64] ss:$12 sps:$4 sm:$0xff]  }
 0x638   :  { %1019 = vmatprep.subr.bf16.mxu0 %v1557_v58  ;;  %1414 = vmatprep.subr.bf16.mxu1 %v1675_v0 }
 0x639   :  { %1049 = vmatprep.mubr.bf16.mxu0 %v1676_v1  ;;  %1428 = vmatprep.mubr.msk.bf16.mxu1 %vm1677_vm0, %v1675_v0  ;;  %v901_v1 = vld [vmem:[#allocation3 + $0x48] sm:$0xff] }
 0x63b   :  { %1020 = vmatpush1.bf16.msra.mxu0 %v1558_v59  ;;  %1415 = vmatpush3.bf16.msra.mxu1 %v1753_v12 }
 0x63c   :  { %1021 = vmatprep.subr.bf16.mxu0 %v1559_v60  ;;  %1416 = vmatprep.subr.bf16.mxu1 %v1675_v0 }
 0x63f   :  { %1022 = vmatpush1.bf16.msra.mxu0 %v1560_v61  ;;  %1417 = vmatpush3.bf16.msra.mxu1 %v1763_v15 }
 0x640   :  { %1023 = vmatprep.subr.bf16.mxu0 %v1561_v9  ;;  %1418 = vmatprep.subr.bf16.mxu1 %v1675_v0 }
 0x643   :  { %1024 = vmatpush1.bf16.msra.mxu0 %v1747_v10  ;;  %1419 = vmatpush3.bf16.msra.mxu1 %v1773_v18  ;;  %v903_v10 = vunpack.c.l.bf16 %v901_v1 }
 0x644   :  { %1025 = vmatprep.subr.bf16.mxu0 %v1750_v11  ;;  %1420 = vmatprep.subr.bf16.mxu1 %v1675_v0 }
 0x647   :  { %1026 = vmatpush1.bf16.msra.mxu0 %v1756_v13  ;;  %1421 = vmatpush3.bf16.msra.mxu1 %v1783_v21 }
 0x648   :  { %1027 = vmatprep.subr.bf16.mxu0 %v1759_v14  ;;  %1422 = vmatprep.subr.bf16.mxu1 %v1675_v0 }
 0x64b   :  { %1028 = vmatpush1.bf16.msra.mxu0 %v1767_v16  ;;  %1423 = vmatpush3.bf16.msra.mxu1 %v1793_v24 }
 0x64c   :  { %1029 = vmatprep.subr.bf16.mxu0 %v1770_v17  ;;  %1424 = vmatprep.subr.bf16.mxu1 %v1675_v0 }
 0x64f   :  { %1030 = vmatpush1.bf16.msra.mxu0 %v1777_v19  ;;  %1425 = vmatpush3.bf16.msra.mxu1 %v1800_v26 }
 0x650   :  { %1031 = vmatprep.subr.bf16.mxu0 %v1780_v20  ;;  %1426 = vmatprep.subr.bf16.mxu1 %v1675_v0  ;;  %v904_v20 = vunpack.c.h.bf16 %v901_v1 }
 0x653   :  { %1032 = vmatpush1.bf16.msra.mxu0 %v1787_v22  ;;  %1427 = vmatpush3.bf16.msra.mxu1 %v1807_v27  ;;  %v902_v27 = vld [vmem:[#allocation3 + $0x50] ss:$12 sps:$4 sm:$0xff]  }
 0x654   :  { %v905_v63 = vunpack.c.l.bf16 %v902_v27  ;;  %v1016_v50 = vunpack.c.h.bf16 %v902_v27 }
 0x6f6   :  { %v940_v11 = vpop.f32.mrf.mxu0  ;;  %v981_v12 = vpop.f32.mrf.mxu1 }
 0x6f7   :  { %v987_v13 = vadd.f32 %v940_v11, %v903_v10  ;;  %v1001_v23 = vadd.f32 %v1848_v45, %v981_v12 }
 0x6f8   :  { %v942_v14 = vpop.f32.mrf.mxu0  ;;  %v1410_v15 = vpop.f32.mrf.mxu1 }
 0x6f9   :  { %v1196_v16 = vmul.f32 -1.442695, %v987_v13  ;;  %v994_v24 = vadd.f32 %v942_v14, %v904_v20 }
 0x6fa   :  { %v944_v17 = vpop.f32.mrf.mxu0  ;;  %v984_v18 = vpop.f32.mrf.mxu1 }
 0x6fb   :  { %1536 = vpow2.f32 %v1196_v16  ;;  %v1197_v0 = vmul.f32 -1.442695, %v994_v24 }
 0x6fc   :  { %v945_v19 = vpop.f32.mrf.mxu0  ;;  %v1411_v21 = vpop.f32.mrf.mxu1 }
 0x6fd   :  { %1538 = vpow2.f32 %v1197_v0 }
 0x708   :  { %v1537_v26 = vpop.eup %1536 }
 0x709   :  { %v991_v22 = vadd.f32 1.0, %v1537_v26 }
 0x70a   :  { %v1539_v62 = vpop.eup %1538 }
 0x70b   :  { %1540 = vrcp.f32 %v991_v22  ;;  %v998_v30 = vadd.f32 1.0, %v1539_v62 }
 0x718   :  { %v1541_v25 = vpop.eup %1540 }
 0x719   :  { %v1002_v28 = vmul.f32 %v1541_v25, %v1001_v23 }
 0x71b   :  { %v1003_v29 = vadd.f32 %v1002_v28, %v905_v63 }
 0x71d   :  { %1542 = vtanh.f32 %v1003_v29 }
 0x71e   :  { %1544 = vrcp.f32 %v998_v30 }
 0x72a   :  { %v1543_v31 = vpop.eup %1542 }
 0x72b   :  { %v1005_v33 = vsub.f32 %v2069_v55, %v1543_v31  ;;  %v1545_v3 = vpop.eup %1544 }
 0x72d   :  { %v1006_v4 = vmul.f32 %v1545_v3, %v1005_v33 }
 0x72f   :  { %v1007_v5 = vadd.f32 %v1543_v31, %v1006_v4 }
 0x731   :  { %v1008_v6 = vpack.c.bf16 %v1007_v5, %v1007_v5 }
 0x733   :  { %1010 = vst [vmem:[#allocation9 + $0x18] sm:$0xf] %v1008_v6  ;;  %1050 = vmatmul.mubr.bf16.vlgmr.msra.gmra.mxu0 %v1008_v6  ;;  %1429 = vmatmul.mubr.bf16.vlgmr.msra.gmra.mxu1 %v1008_v6 }
 0x7f3   :  { %v1051_v34 = vpop.f32.mrf.mxu0  ;;  %v1092_v35 = vpop.f32.mrf.mxu1 }
 0x7f4   :  { %v1098_v36 = vadd.f32 %v1051_v34, %v1014_v8  ;;  %v1112_v51 = vadd.f32 %v1848_v45, %v1092_v35 }
 0x7f5   :  { %v1053_v37 = vpop.f32.mrf.mxu0  ;;  %v1430_v38 = vpop.f32.mrf.mxu1 }
 0x7f6   :  { %v1198_v39 = vmul.f32 -1.442695, %v1098_v36  ;;  %v1105_v43 = vadd.f32 %v1053_v37, %v1015_v2 }
 0x7f7   :  { %v1055_v32 = vpop.f32.mrf.mxu0  ;;  %v1095_v40 = vpop.f32.mrf.mxu1 }
 0x7f8   :  { %1546 = vpow2.f32 %v1198_v39  ;;  %v1199_v44 = vmul.f32 -1.442695, %v1105_v43 }
 0x7f9   :  { %v1056_v41 = vpop.f32.mrf.mxu0  ;;  %v1431_v42 = vpop.f32.mrf.mxu1 }
 0x7fa   :  { %1548 = vpow2.f32 %v1199_v44 }
 0x805   :  { %v1547_v47 = vpop.eup %1546 }
 0x806   :  { %v1102_v48 = vadd.f32 1.0, %v1547_v47 }
 0x807   :  { %v1549_v49 = vpop.eup %1548 }
 0x808   :  { %1550 = vrcp.f32 %v1102_v48  ;;  %v1109_v54 = vadd.f32 1.0, %v1549_v49 }
 0x815   :  { %v1551_v52 = vpop.eup %1550 }
 0x816   :  { %v1113_v53 = vmul.f32 %v1551_v52, %v1112_v51 }
 0x818   :  { %v1114_v46 = vadd.f32 %v1113_v53, %v1016_v50 }
 0x81a   :  { %1552 = vtanh.f32 %v1114_v46 }
 0x81b   :  { %1554 = vrcp.f32 %v1109_v54 }
 0x827   :  { %v1553_v55 = vpop.eup %1552 }
 0x828   :  { %v1116_v56 = vsub.f32 %v1007_v5, %v1553_v55  ;;  %v1555_v57 = vpop.eup %1554 }
 0x82a   :  { %v1117_v58 = vmul.f32 %v1555_v57, %v1116_v56 }
 0x82c   :  { %v1118_v59 = vadd.f32 %v1553_v55, %v1117_v58 }
 0x82e   :  { %v1119_v60 = vpack.c.bf16 %v1118_v59, %v1118_v59  ;;  %1126 = vst [vmem:[#allocation10] sm:$0xff] %v1118_v59 }
 0x82f   :  { %1633 = shalt.err (!%p1630_p5)
}
 0x830   :  { %1148 = dma.vmem_to_hbm [thread:$0]  %s1146_s9, 128, %s2114_s5, [#allocation11]   ;;  %1121 = vst [vmem:[#allocation9 + $0x1c] sm:$0xf] %v1119_v60 }
 0x831   :  { %s1642_s15 = scalar_lea.vmem %s1133_s11, 512  ;;  %p1647_p7 = scmp.lt.s32.totalorder %s1133_s11, %s1133_s11 }
 0x832   :  { %p1643_p6 = scmp.ne.s32.totalorder %s1133_s11, %s1642_s15  ;;  %p1648_p8 = scmp.lt.s32.totalorder %s1642_s15, %s1642_s15 }
 0x834   :  { %p1649_p9 = por %p1648_p8, %p1647_p7 }
 0x836   :  { %p1650_p10 = pnand %p1649_p9, %p1643_p6 }
 0x838   :  { %1653 = shalt.err (!%p1650_p10)
}
 0x839   :  { %s1680_s16 = smov 64   ;;  %s1681_s17 = smov 4  }
 0x83a   :  { %1138 = dma.vmem_to_hbm [thread:$0]  %s1133_s11, 512, %s2113_s4, [#allocation5], %s1680_s16, %s1680_s16, %s1681_s17  }
 0x83b   :  { %1666 = dma.done.wait [#allocation5], 512  }
 0x83c   :  { %1667 = vsyncadd [#allocation5], 4294966784 }
 0x83d   :  { %1668 = dma.done.wait [#allocation11], 128  }
 0x83e   :  { %1669 = vsyncadd [#allocation11], 4294967168 }
 0x83f   :  { %1155 = vsyncpa [#allocation4], 1 }
 0x840   :  { %1156 = vsyncpa [#allocation7], 1 }
 0x841   :  { %1157 = vsyncpa [#allocation5], 1 }
 0x842   :  { %1158 = vsyncpa [#allocation11], 1 }

</bundles_post_ra>
